<compile_context>
chip_gen: v7x
topology: tpu7x:2x2x1
jax: 0.10.0
libtpu: 0.0.40
codegen_flags: <defaults>
</compile_context>

<pallas_src>
import functools
import math

import jax
import jax.numpy as jnp
from jax import lax
from jax.experimental import pallas as pl
from jax.experimental.pallas import tpu as pltpu


def _layernorm(x, g, b, eps=1e-5):
    # PyTorch nn.LayerNorm semantics: biased variance over last dim, eps=1e-5.
    mean = jnp.mean(x, axis=-1, keepdims=True)
    var = jnp.mean(jnp.square(x - mean), axis=-1, keepdims=True)
    return (x - mean) * lax.rsqrt(var + eps) * g + b


def _transformer_cls_kernel(x_ref, w_emb, b_emb, wqkv, bqkv, wo, bo,
                            g1, be1, w1, b1, w2, b2, g2, be2,
                            gf, bf_final, wdec, bdec, out_ref,
                            *, num_layers, d_model, batch, seq):
    B, S, D = batch, seq, d_model
    bf16 = jnp.bfloat16

    # ---- input_emb + ReLU on the fused (B*S, C_pad) slab ----
    x = x_ref[...].reshape(B * S, x_ref.shape[-1])
    h = jnp.dot(x.astype(bf16), w_emb[...],
                preferred_element_type=jnp.float32) + b_emb[...]
    h = jnp.maximum(h, 0.0)                                    # (B*S, D) f32

    scale = 1.0 / math.sqrt(D)                                 # nhead == 1 -> head_dim == D

    # num_layers is small here -> static unroll.
    # TODO(synk): switch to lax.fori_loop with dynamic ref[l] indexing if L grows.
    for l in range(num_layers):
        # ---- single-head self-attention, fused QKV projection ----
        qkv = jnp.dot(h.astype(bf16), wqkv[l],
                      preferred_element_type=jnp.float32) + bqkv[l]   # (B*S, 3D)
        q = qkv[:, 0 * D:1 * D].reshape(B, S, D)
        k = qkv[:, 1 * D:2 * D].reshape(B, S, D)
        v = qkv[:, 2 * D:3 * D].reshape(B, S, D)

        scores = jnp.einsum('bqd,bkd->bqk', q.astype(bf16), k.astype(bf16),
                            preferred_element_type=jnp.float32) * scale  # (B, S, S)
        scores = scores - jnp.max(scores, axis=-1, keepdims=True)
        p = jnp.exp(scores)
        p = p * pl.reciprocal(jnp.sum(p, axis=-1, keepdims=True), approx=True)

        ctx = jnp.einsum('bqk,bkd->bqd', p.astype(bf16), v.astype(bf16),
                         preferred_element_type=jnp.float32)             # (B, S, D)
        ctx = ctx.reshape(B * S, D)
        attn = jnp.dot(ctx.astype(bf16), wo[l],
                       preferred_element_type=jnp.float32) + bo[l]
        # residual + post-norm (PyTorch default norm_first=False); dropout == identity
        h = _layernorm(h + attn, g1[l], be1[l])

        # ---- feed-forward (activation='relu') ----
        ff = jnp.dot(h.astype(bf16), w1[l],
                     preferred_element_type=jnp.float32) + b1[l]
        ff = jnp.maximum(ff, 0.0)
        ff = jnp.dot(ff.astype(bf16), w2[l],
                     preferred_element_type=jnp.float32) + b2[l]
        h = _layernorm(h + ff, g2[l], be2[l])

    # final encoder norm (TransformerEncoder(norm=LayerNorm(ninp)))
    h = _layernorm(h, gf[...], bf_final[...])
    # max_pool1d over the whole sequence + squeeze -> (B, D)
    pooled = jnp.max(h.reshape(B, S, D), axis=1)
    # decoder (lane-dense padded output, unmasked full-block store)
    logits = jnp.dot(pooled.astype(bf16), wdec[...],
                     preferred_element_type=jnp.float32) + bdec[...]
    out_ref[...] = logits


def _prepare_params(params, *, num_classes, c_pad, n_pad):
    """Fuse QKV, pad the embedding/decoder weights, cast matmul weights to bf16."""
    (w_emb, b_emb, wq, bq, wk, bk, wv, bv, wo, bo,
     g1, be1, w1, b1, w2, b2, g2, be2, gf, bf_final, wdec, bdec) = params
    C, D = w_emb.shape
    bf16 = jnp.bfloat16

    w_emb_p = jnp.zeros((c_pad, D), jnp.float32).at[:C, :].set(w_emb).astype(bf16)
    wqkv = jnp.concatenate([wq, wk, wv], axis=-1).astype(bf16)          # (L, D, 3D)
    bqkv = jnp.concatenate([bq, bk, bv], axis=-1)                       # (L, 1, 3D) f32
    wdec_p = (jnp.zeros((D, n_pad), jnp.float32)
              .at[:, :num_classes].set(wdec).astype(bf16))
    bdec_p = jnp.zeros((1, n_pad), jnp.float32).at[:, :num_classes].set(bdec)

    return [w_emb_p, b_emb, wqkv, bqkv, wo.astype(bf16), bo,
            g1, be1, w1.astype(bf16), b1, w2.astype(bf16), b2, g2, be2,
            gf, bf_final, wdec_p, bdec_p]


def transformer_classification_forward(x, params, *, num_layers, d_model, num_classes):
    B, S, C = x.shape
    c_pad = max(8, -(-C // 8) * 8)       # pad contraction dim to a sublane multiple
    n_pad = 128                          # lane-dense decoder output
    x_pad = jnp.pad(x, ((0, 0), (0, 0), (0, c_pad - C)))
    prepped = _prepare_params(params, num_classes=num_classes, c_pad=c_pad, n_pad=n_pad)

    D, L = d_model, num_layers
    F = params[12].shape[-1]             # dim_feedforward (linear1 out features)
    flops = (2 * B * S * c_pad * D                                  # embedding
             + L * 2 * B * S * (3 * D * D + D * D + 2 * D * F)      # qkv / out / ffn
             + L * 2 * B * S * S * D * 2                            # scores + ctx
             + 2 * B * D * n_pad)                                   # decoder
    bytes_accessed = (x_pad.size * x_pad.dtype.itemsize
                      + sum(int(p.size) * p.dtype.itemsize for p in prepped)
                      + B * n_pad * 4)
    ce = pl.CostEstimate(flops=flops, transcendentals=L * B * S * S,
                         bytes_accessed=bytes_accessed)

    kernel = functools.partial(_transformer_cls_kernel, num_layers=num_layers,
                               d_model=d_model, batch=B, seq=S)

    n_in = 1 + len(prepped)
    out = pl.pallas_call(
        kernel,
        out_shape=jax.ShapeDtypeStruct((B, n_pad), jnp.float32),
        in_specs=[pl.BlockSpec(memory_space=pltpu.MemorySpace.VMEM)] * n_in,
        out_specs=pl.BlockSpec(memory_space=pltpu.MemorySpace.VMEM),
        cost_estimate=ce,
    )(x_pad, *prepped)
    return out[:, :num_classes]


def init_params(key, *, num_classes, in_channels, ninp, embed_dims, num_layers,
                init_std=0.02):
    ks = iter(jax.random.split(key, 64))

    def w(shape, std=init_std):
        return jax.random.normal(next(ks), shape, jnp.float32) * std

    L, C, D, F = num_layers, in_channels, ninp, embed_dims
    params = [
        w((C, D)), w((1, D)),                                   # input_emb W, b
        w((L, D, D)), w((L, 1, D)),                             # Wq, bq
        w((L, D, D)), w((L, 1, D)),                             # Wk, bk
        w((L, D, D)), w((L, 1, D)),                             # Wv, bv
        w((L, D, D)), w((L, 1, D)),                             # attn out_proj W, b
        jnp.ones((L, 1, D), jnp.float32), jnp.zeros((L, 1, D), jnp.float32),  # norm1
        w((L, D, F)), w((L, 1, F)),                             # linear1 W, b
        w((L, F, D)), w((L, 1, D)),                             # linear2 W, b
        jnp.ones((L, 1, D), jnp.float32), jnp.zeros((L, 1, D), jnp.float32),  # norm2
        jnp.ones((1, D), jnp.float32), jnp.zeros((1, D), jnp.float32),        # final norm
        w((D, num_classes)), w((1, num_classes)),               # decoder W, b
    ]
    return params


def reference_forward(x, params, *, num_layers, d_model):
    (w_emb, b_emb, wq, bq, wk, bk, wv, bv, wo, bo,
     g1, be1, w1, b1, w2, b2, g2, be2, gf, bf_final, wdec, bdec) = params
    h = jnp.maximum(x @ w_emb + b_emb, 0.0)
    scale = 1.0 / math.sqrt(d_model)
    for l in range(num_layers):
        q = h @ wq[l] + bq[l]
        k = h @ wk[l] + bk[l]
        v = h @ wv[l] + bv[l]
        scores = jnp.einsum("bqd,bkd->bqk", q, k) * scale
        p = jax.nn.softmax(scores, axis=-1)
        ctx = jnp.einsum("bqk,bkd->bqd", p, v)
        attn = ctx @ wo[l] + bo[l]
        h = _layernorm(h + attn, g1[l], be1[l])
        ff = jnp.maximum(h @ w1[l] + b1[l], 0.0)
        ff = ff @ w2[l] + b2[l]
        h = _layernorm(h + ff, g2[l], be2[l])
    h = _layernorm(h, gf, bf_final)
    pooled = jnp.max(h, axis=1)
    return pooled @ wdec + bdec


if __name__ == "__main__":
    # small shapes consistent with the module: batch=2, seq=8, in_channels=6,
    # ninp=64, dim_feedforward=256, num_heads=1, num_layers=2, num_classes=5
    B, S = 2, 8
    num_classes, in_channels, ninp, embed_dims, num_layers = 5, 6, 64, 256, 2

    key = jax.random.PRNGKey(0)
    kx, kp = jax.random.split(key)
    x = jax.random.normal(kx, (B, S, in_channels), jnp.float32)
    params = init_params(kp, num_classes=num_classes, in_channels=in_channels,
                         ninp=ninp, embed_dims=embed_dims, num_layers=num_layers)

    out = transformer_classification_forward(
        x, params, num_layers=num_layers, d_model=ninp, num_classes=num_classes)
    out = jax.block_until_ready(out)

    ref = reference_forward(x, params, num_layers=num_layers, d_model=ninp)
    assert out.shape == (B, num_classes)
    assert bool(jnp.all(jnp.isfinite(out)))
    assert bool(jnp.allclose(out, ref, atol=2e-2, rtol=2e-2)), (out, ref)
    print("KERNEL_OK")
</pallas_src>

<mosaic_0001>
module attributes {stable_mosaic.version = 11 : i64} {
  func.func @_transformer_cls_kernel(%arg0: memref<2x8x8xf32, #tpu.memory_space<vmem>>, %arg1: memref<8x64xbf16, #tpu.memory_space<vmem>>, %arg2: memref<1x64xf32, #tpu.memory_space<vmem>>, %arg3: memref<2x64x192xbf16, #tpu.memory_space<vmem>>, %arg4: memref<2x1x192xf32, #tpu.memory_space<vmem>>, %arg5: memref<2x64x64xbf16, #tpu.memory_space<vmem>>, %arg6: memref<2x1x64xf32, #tpu.memory_space<vmem>>, %arg7: memref<2x1x64xf32, #tpu.memory_space<vmem>>, %arg8: memref<2x1x64xf32, #tpu.memory_space<vmem>>, %arg9: memref<2x64x256xbf16, #tpu.memory_space<vmem>>, %arg10: memref<2x1x256xf32, #tpu.memory_space<vmem>>, %arg11: memref<2x256x64xbf16, #tpu.memory_space<vmem>>, %arg12: memref<2x1x64xf32, #tpu.memory_space<vmem>>, %arg13: memref<2x1x64xf32, #tpu.memory_space<vmem>>, %arg14: memref<2x1x64xf32, #tpu.memory_space<vmem>>, %arg15: memref<1x64xf32, #tpu.memory_space<vmem>>, %arg16: memref<1x64xf32, #tpu.memory_space<vmem>>, %arg17: memref<64x128xbf16, #tpu.memory_space<vmem>>, %arg18: memref<1x128xf32, #tpu.memory_space<vmem>>, %arg19: memref<2x128xf32, #tpu.memory_space<vmem>>) attributes {dimension_semantics = [], scalar_prefetch = 0 : i64, scratch_operands = 0 : i64, tpu.core_type = #tpu.core_type<tc>} {
    %c0 = arith.constant 0 : index
    %c0_0 = arith.constant 0 : index
    %c0_1 = arith.constant 0 : index
    %0 = vector.load %arg0[%c0, %c0_0, %c0_1] : memref<2x8x8xf32, #tpu.memory_space<vmem>>, vector<2x8x8xf32>
    %1 = vector.shape_cast %0 : vector<2x8x8xf32> to vector<16x8xf32>
    %2 = arith.truncf %1 : vector<16x8xf32> to vector<16x8xbf16>
    %c0_2 = arith.constant 0 : index
    %c0_3 = arith.constant 0 : index
    %3 = vector.load %arg1[%c0_2, %c0_3] : memref<8x64xbf16, #tpu.memory_space<vmem>>, vector<8x64xbf16>
    %cst = arith.constant dense<0.000000e+00> : vector<16x64xf32>
    %4 = tpu.matmul %2, %3, %cst {dimension_numbers = #tpu.dot_dimension_numbers<[1], [0], [0], [1], [0, 0, 1, 1], [], []>} : vector<16x8xbf16>, vector<8x64xbf16>, vector<16x64xf32> -> vector<16x64xf32>
    %c0_4 = arith.constant 0 : index
    %c0_5 = arith.constant 0 : index
    %5 = vector.load %arg2[%c0_4, %c0_5] : memref<1x64xf32, #tpu.memory_space<vmem>>, vector<1x64xf32>
    %6 = vector.broadcast %5 : vector<1x64xf32> to vector<16x64xf32>
    %7 = arith.addf %4, %6 : vector<16x64xf32>
    %cst_6 = arith.constant 0.000000e+00 : f32
    %8 = vector.broadcast %cst_6 : f32 to vector<16x64xf32>
    %9 = arith.maximumf %7, %8 : vector<16x64xf32>
    %10 = arith.truncf %9 : vector<16x64xf32> to vector<16x64xbf16>
    %c0_7 = arith.constant 0 : index
    %c0_8 = arith.constant 0 : index
    %c0_9 = arith.constant 0 : index
    %11 = vector.load %arg3[%c0_7, %c0_8, %c0_9] : memref<2x64x192xbf16, #tpu.memory_space<vmem>>, vector<1x64x192xbf16>
    %12 = vector.shape_cast %11 : vector<1x64x192xbf16> to vector<64x192xbf16>
    %cst_10 = arith.constant dense<0.000000e+00> : vector<16x192xf32>
    %13 = tpu.matmul %10, %12, %cst_10 {dimension_numbers = #tpu.dot_dimension_numbers<[1], [0], [0], [1], [0, 0, 1, 1], [], []>} : vector<16x64xbf16>, vector<64x192xbf16>, vector<16x192xf32> -> vector<16x192xf32>
    %c0_11 = arith.constant 0 : index
    %c0_12 = arith.constant 0 : index
    %c0_13 = arith.constant 0 : index
    %14 = vector.load %arg4[%c0_11, %c0_12, %c0_13] : memref<2x1x192xf32, #tpu.memory_space<vmem>>, vector<1x1x192xf32>
    %15 = vector.shape_cast %14 : vector<1x1x192xf32> to vector<1x192xf32>
    %16 = vector.broadcast %15 : vector<1x192xf32> to vector<16x192xf32>
    %17 = arith.addf %13, %16 : vector<16x192xf32>
    %18 = vector.extract_strided_slice %17 {offsets = [0, 0], sizes = [16, 64], strides = [1, 1]} : vector<16x192xf32> to vector<16x64xf32>
    %19 = vector.shape_cast %18 : vector<16x64xf32> to vector<2x8x64xf32>
    %20 = vector.extract_strided_slice %17 {offsets = [0, 64], sizes = [16, 64], strides = [1, 1]} : vector<16x192xf32> to vector<16x64xf32>
    %21 = vector.shape_cast %20 : vector<16x64xf32> to vector<2x8x64xf32>
    %22 = vector.extract_strided_slice %17 {offsets = [0, 128], sizes = [16, 64], strides = [1, 1]} : vector<16x192xf32> to vector<16x64xf32>
    %23 = vector.shape_cast %22 : vector<16x64xf32> to vector<2x8x64xf32>
    %24 = arith.truncf %19 : vector<2x8x64xf32> to vector<2x8x64xbf16>
    %25 = arith.truncf %21 : vector<2x8x64xf32> to vector<2x8x64xbf16>
    "tpu.trace_start"() <{level = 10 : i32, message = "bqd,bkd->bqk"}> : () -> ()
    %cst_14 = arith.constant dense<0.000000e+00> : vector<2x8x8xf32>
    %26 = tpu.matmul %24, %25, %cst_14 {dimension_numbers = #tpu.dot_dimension_numbers<[2], [2], [1], [1], [0, 0, 0, 1, 1, 1], [0], [0]>} : vector<2x8x64xbf16>, vector<2x8x64xbf16>, vector<2x8x8xf32> -> vector<2x8x8xf32>
    "tpu.trace_stop"() : () -> ()
    %cst_15 = arith.constant 1.250000e-01 : f32
    %27 = vector.broadcast %cst_15 : f32 to vector<2x8x8xf32>
    %28 = arith.mulf %26, %27 : vector<2x8x8xf32>
    %cst_16 = arith.constant dense<0xFF800000> : vector<2x8xf32>
    %29 = vector.multi_reduction <maximumf>, %28, %cst_16 [2] : vector<2x8x8xf32> to vector<2x8xf32>
    %30 = vector.shape_cast %29 : vector<2x8xf32> to vector<2x8x1xf32>
    %31 = vector.broadcast %30 : vector<2x8x1xf32> to vector<2x8x8xf32>
    %32 = arith.subf %28, %31 : vector<2x8x8xf32>
    %33 = math.exp %32 : vector<2x8x8xf32>
    %cst_17 = arith.constant dense<0.000000e+00> : vector<2x8xf32>
    %34 = vector.multi_reduction <add>, %33, %cst_17 [2] : vector<2x8x8xf32> to vector<2x8xf32>
    %35 = vector.shape_cast %34 : vector<2x8xf32> to vector<2x8x1xf32>
    %36 = tpu.reciprocal %35 {approx = true} : vector<2x8x1xf32> -> vector<2x8x1xf32>
    %37 = vector.broadcast %36 : vector<2x8x1xf32> to vector<2x8x8xf32>
    %38 = arith.mulf %33, %37 : vector<2x8x8xf32>
    %39 = arith.truncf %38 : vector<2x8x8xf32> to vector<2x8x8xbf16>
    %40 = arith.truncf %23 : vector<2x8x64xf32> to vector<2x8x64xbf16>
    "tpu.trace_start"() <{level = 10 : i32, message = "bqk,bkd->bqd"}> : () -> ()
    %cst_18 = arith.constant dense<0.000000e+00> : vector<2x8x64xf32>
    %41 = tpu.matmul %39, %40, %cst_18 {dimension_numbers = #tpu.dot_dimension_numbers<[2], [1], [1], [2], [0, 0, 0, 1, 1, 2], [0], [0]>} : vector<2x8x8xbf16>, vector<2x8x64xbf16>, vector<2x8x64xf32> -> vector<2x8x64xf32>
    "tpu.trace_stop"() : () -> ()
    %42 = vector.shape_cast %41 : vector<2x8x64xf32> to vector<16x64xf32>
    %43 = arith.truncf %42 : vector<16x64xf32> to vector<16x64xbf16>
    %c0_19 = arith.constant 0 : index
    %c0_20 = arith.constant 0 : index
    %c0_21 = arith.constant 0 : index
    %44 = vector.load %arg5[%c0_19, %c0_20, %c0_21] : memref<2x64x64xbf16, #tpu.memory_space<vmem>>, vector<1x64x64xbf16>
    %45 = vector.shape_cast %44 : vector<1x64x64xbf16> to vector<64x64xbf16>
    %cst_22 = arith.constant dense<0.000000e+00> : vector<16x64xf32>
    %46 = tpu.matmul %43, %45, %cst_22 {dimension_numbers = #tpu.dot_dimension_numbers<[1], [0], [0], [1], [0, 0, 1, 1], [], []>} : vector<16x64xbf16>, vector<64x64xbf16>, vector<16x64xf32> -> vector<16x64xf32>
    %c0_23 = arith.constant 0 : index
    %c0_24 = arith.constant 0 : index
    %c0_25 = arith.constant 0 : index
    %47 = vector.load %arg6[%c0_23, %c0_24, %c0_25] : memref<2x1x64xf32, #tpu.memory_space<vmem>>, vector<1x1x64xf32>
    %48 = vector.shape_cast %47 : vector<1x1x64xf32> to vector<1x64xf32>
    %49 = vector.broadcast %48 : vector<1x64xf32> to vector<16x64xf32>
    %50 = arith.addf %46, %49 : vector<16x64xf32>
    %51 = arith.addf %9, %50 : vector<16x64xf32>
    %c0_26 = arith.constant 0 : index
    %c0_27 = arith.constant 0 : index
    %c0_28 = arith.constant 0 : index
    %52 = vector.load %arg7[%c0_26, %c0_27, %c0_28] : memref<2x1x64xf32, #tpu.memory_space<vmem>>, vector<1x1x64xf32>
    %53 = vector.shape_cast %52 : vector<1x1x64xf32> to vector<1x64xf32>
    %c0_29 = arith.constant 0 : index
    %c0_30 = arith.constant 0 : index
    %c0_31 = arith.constant 0 : index
    %54 = vector.load %arg8[%c0_29, %c0_30, %c0_31] : memref<2x1x64xf32, #tpu.memory_space<vmem>>, vector<1x1x64xf32>
    %55 = vector.shape_cast %54 : vector<1x1x64xf32> to vector<1x64xf32>
    %cst_32 = arith.constant dense<0.000000e+00> : vector<16xf32>
    %56 = vector.multi_reduction <add>, %51, %cst_32 [1] : vector<16x64xf32> to vector<16xf32>
    %57 = vector.shape_cast %56 : vector<16xf32> to vector<16x1xf32>
    %cst_33 = arith.constant 6.400000e+01 : f32
    %58 = vector.broadcast %cst_33 : f32 to vector<16x1xf32>
    %59 = arith.divf %57, %58 : vector<16x1xf32>
    %60 = vector.broadcast %59 : vector<16x1xf32> to vector<16x64xf32>
    %61 = arith.subf %51, %60 : vector<16x64xf32>
    %62 = arith.mulf %61, %61 : vector<16x64xf32>
    %cst_34 = arith.constant dense<0.000000e+00> : vector<16xf32>
    %63 = vector.multi_reduction <add>, %62, %cst_34 [1] : vector<16x64xf32> to vector<16xf32>
    %64 = vector.shape_cast %63 : vector<16xf32> to vector<16x1xf32>
    %cst_35 = arith.constant 6.400000e+01 : f32
    %65 = vector.broadcast %cst_35 : f32 to vector<16x1xf32>
    %66 = arith.divf %64, %65 : vector<16x1xf32>
    %67 = vector.broadcast %59 : vector<16x1xf32> to vector<16x64xf32>
    %68 = arith.subf %51, %67 : vector<16x64xf32>
    %cst_36 = arith.constant 9.99999974E-6 : f32
    %69 = vector.broadcast %cst_36 : f32 to vector<16x1xf32>
    %70 = arith.addf %66, %69 : vector<16x1xf32>
    %71 = math.rsqrt %70 : vector<16x1xf32>
    %72 = vector.broadcast %71 : vector<16x1xf32> to vector<16x64xf32>
    %73 = arith.mulf %68, %72 : vector<16x64xf32>
    %74 = vector.broadcast %53 : vector<1x64xf32> to vector<16x64xf32>
    %75 = arith.mulf %73, %74 : vector<16x64xf32>
    %76 = vector.broadcast %55 : vector<1x64xf32> to vector<16x64xf32>
    %77 = arith.addf %75, %76 : vector<16x64xf32>
    %78 = arith.truncf %77 : vector<16x64xf32> to vector<16x64xbf16>
    %c0_37 = arith.constant 0 : index
    %c0_38 = arith.constant 0 : index
    %c0_39 = arith.constant 0 : index
    %79 = vector.load %arg9[%c0_37, %c0_38, %c0_39] : memref<2x64x256xbf16, #tpu.memory_space<vmem>>, vector<1x64x256xbf16>
    %80 = vector.shape_cast %79 : vector<1x64x256xbf16> to vector<64x256xbf16>
    %cst_40 = arith.constant dense<0.000000e+00> : vector<16x256xf32>
    %81 = tpu.matmul %78, %80, %cst_40 {dimension_numbers = #tpu.dot_dimension_numbers<[1], [0], [0], [1], [0, 0, 1, 1], [], []>} : vector<16x64xbf16>, vector<64x256xbf16>, vector<16x256xf32> -> vector<16x256xf32>
    %c0_41 = arith.constant 0 : index
    %c0_42 = arith.constant 0 : index
    %c0_43 = arith.constant 0 : index
    %82 = vector.load %arg10[%c0_41, %c0_42, %c0_43] : memref<2x1x256xf32, #tpu.memory_space<vmem>>, vector<1x1x256xf32>
    %83 = vector.shape_cast %82 : vector<1x1x256xf32> to vector<1x256xf32>
    %84 = vector.broadcast %83 : vector<1x256xf32> to vector<16x256xf32>
    %85 = arith.addf %81, %84 : vector<16x256xf32>
    %cst_44 = arith.constant 0.000000e+00 : f32
    %86 = vector.broadcast %cst_44 : f32 to vector<16x256xf32>
    %87 = arith.maximumf %85, %86 : vector<16x256xf32>
    %88 = arith.truncf %87 : vector<16x256xf32> to vector<16x256xbf16>
    %c0_45 = arith.constant 0 : index
    %c0_46 = arith.constant 0 : index
    %c0_47 = arith.constant 0 : index
    %89 = vector.load %arg11[%c0_45, %c0_46, %c0_47] : memref<2x256x64xbf16, #tpu.memory_space<vmem>>, vector<1x256x64xbf16>
    %90 = vector.shape_cast %89 : vector<1x256x64xbf16> to vector<256x64xbf16>
    %cst_48 = arith.constant dense<0.000000e+00> : vector<16x64xf32>
    %91 = tpu.matmul %88, %90, %cst_48 {dimension_numbers = #tpu.dot_dimension_numbers<[1], [0], [0], [1], [0, 0, 1, 1], [], []>} : vector<16x256xbf16>, vector<256x64xbf16>, vector<16x64xf32> -> vector<16x64xf32>
    %c0_49 = arith.constant 0 : index
    %c0_50 = arith.constant 0 : index
    %c0_51 = arith.constant 0 : index
    %92 = vector.load %arg12[%c0_49, %c0_50, %c0_51] : memref<2x1x64xf32, #tpu.memory_space<vmem>>, vector<1x1x64xf32>
    %93 = vector.shape_cast %92 : vector<1x1x64xf32> to vector<1x64xf32>
    %94 = vector.broadcast %93 : vector<1x64xf32> to vector<16x64xf32>
    %95 = arith.addf %91, %94 : vector<16x64xf32>
    %96 = arith.addf %77, %95 : vector<16x64xf32>
    %c0_52 = arith.constant 0 : index
    %c0_53 = arith.constant 0 : index
    %c0_54 = arith.constant 0 : index
    %97 = vector.load %arg13[%c0_52, %c0_53, %c0_54] : memref<2x1x64xf32, #tpu.memory_space<vmem>>, vector<1x1x64xf32>
    %98 = vector.shape_cast %97 : vector<1x1x64xf32> to vector<1x64xf32>
    %c0_55 = arith.constant 0 : index
    %c0_56 = arith.constant 0 : index
    %c0_57 = arith.constant 0 : index
    %99 = vector.load %arg14[%c0_55, %c0_56, %c0_57] : memref<2x1x64xf32, #tpu.memory_space<vmem>>, vector<1x1x64xf32>
    %100 = vector.shape_cast %99 : vector<1x1x64xf32> to vector<1x64xf32>
    %cst_58 = arith.constant dense<0.000000e+00> : vector<16xf32>
    %101 = vector.multi_reduction <add>, %96, %cst_58 [1] : vector<16x64xf32> to vector<16xf32>
    %102 = vector.shape_cast %101 : vector<16xf32> to vector<16x1xf32>
    %cst_59 = arith.constant 6.400000e+01 : f32
    %103 = vector.broadcast %cst_59 : f32 to vector<16x1xf32>
    %104 = arith.divf %102, %103 : vector<16x1xf32>
    %105 = vector.broadcast %104 : vector<16x1xf32> to vector<16x64xf32>
    %106 = arith.subf %96, %105 : vector<16x64xf32>
    %107 = arith.mulf %106, %106 : vector<16x64xf32>
    %cst_60 = arith.constant dense<0.000000e+00> : vector<16xf32>
    %108 = vector.multi_reduction <add>, %107, %cst_60 [1] : vector<16x64xf32> to vector<16xf32>
    %109 = vector.shape_cast %108 : vector<16xf32> to vector<16x1xf32>
    %cst_61 = arith.constant 6.400000e+01 : f32
    %110 = vector.broadcast %cst_61 : f32 to vector<16x1xf32>
    %111 = arith.divf %109, %110 : vector<16x1xf32>
    %112 = vector.broadcast %104 : vector<16x1xf32> to vector<16x64xf32>
    %113 = arith.subf %96, %112 : vector<16x64xf32>
    %cst_62 = arith.constant 9.99999974E-6 : f32
    %114 = vector.broadcast %cst_62 : f32 to vector<16x1xf32>
    %115 = arith.addf %111, %114 : vector<16x1xf32>
    %116 = math.rsqrt %115 : vector<16x1xf32>
    %117 = vector.broadcast %116 : vector<16x1xf32> to vector<16x64xf32>
    %118 = arith.mulf %113, %117 : vector<16x64xf32>
    %119 = vector.broadcast %98 : vector<1x64xf32> to vector<16x64xf32>
    %120 = arith.mulf %118, %119 : vector<16x64xf32>
    %121 = vector.broadcast %100 : vector<1x64xf32> to vector<16x64xf32>
    %122 = arith.addf %120, %121 : vector<16x64xf32>
    %123 = arith.truncf %122 : vector<16x64xf32> to vector<16x64xbf16>
    %c1 = arith.constant 1 : index
    %c0_63 = arith.constant 0 : index
    %c0_64 = arith.constant 0 : index
    %124 = vector.load %arg3[%c1, %c0_63, %c0_64] : memref<2x64x192xbf16, #tpu.memory_space<vmem>>, vector<1x64x192xbf16>
    %125 = vector.shape_cast %124 : vector<1x64x192xbf16> to vector<64x192xbf16>
    %cst_65 = arith.constant dense<0.000000e+00> : vector<16x192xf32>
    %126 = tpu.matmul %123, %125, %cst_65 {dimension_numbers = #tpu.dot_dimension_numbers<[1], [0], [0], [1], [0, 0, 1, 1], [], []>} : vector<16x64xbf16>, vector<64x192xbf16>, vector<16x192xf32> -> vector<16x192xf32>
    %c1_66 = arith.constant 1 : index
    %c0_67 = arith.constant 0 : index
    %c0_68 = arith.constant 0 : index
    %127 = vector.load %arg4[%c1_66, %c0_67, %c0_68] : memref<2x1x192xf32, #tpu.memory_space<vmem>>, vector<1x1x192xf32>
    %128 = vector.shape_cast %127 : vector<1x1x192xf32> to vector<1x192xf32>
    %129 = vector.broadcast %128 : vector<1x192xf32> to vector<16x192xf32>
    %130 = arith.addf %126, %129 : vector<16x192xf32>
    %131 = vector.extract_strided_slice %130 {offsets = [0, 0], sizes = [16, 64], strides = [1, 1]} : vector<16x192xf32> to vector<16x64xf32>
    %132 = vector.shape_cast %131 : vector<16x64xf32> to vector<2x8x64xf32>
    %133 = vector.extract_strided_slice %130 {offsets = [0, 64], sizes = [16, 64], strides = [1, 1]} : vector<16x192xf32> to vector<16x64xf32>
    %134 = vector.shape_cast %133 : vector<16x64xf32> to vector<2x8x64xf32>
    %135 = vector.extract_strided_slice %130 {offsets = [0, 128], sizes = [16, 64], strides = [1, 1]} : vector<16x192xf32> to vector<16x64xf32>
    %136 = vector.shape_cast %135 : vector<16x64xf32> to vector<2x8x64xf32>
    %137 = arith.truncf %132 : vector<2x8x64xf32> to vector<2x8x64xbf16>
    %138 = arith.truncf %134 : vector<2x8x64xf32> to vector<2x8x64xbf16>
    "tpu.trace_start"() <{level = 10 : i32, message = "bqd,bkd->bqk"}> : () -> ()
    %cst_69 = arith.constant dense<0.000000e+00> : vector<2x8x8xf32>
    %139 = tpu.matmul %137, %138, %cst_69 {dimension_numbers = #tpu.dot_dimension_numbers<[2], [2], [1], [1], [0, 0, 0, 1, 1, 1], [0], [0]>} : vector<2x8x64xbf16>, vector<2x8x64xbf16>, vector<2x8x8xf32> -> vector<2x8x8xf32>
    "tpu.trace_stop"() : () -> ()
    %cst_70 = arith.constant 1.250000e-01 : f32
    %140 = vector.broadcast %cst_70 : f32 to vector<2x8x8xf32>
    %141 = arith.mulf %139, %140 : vector<2x8x8xf32>
    %cst_71 = arith.constant dense<0xFF800000> : vector<2x8xf32>
    %142 = vector.multi_reduction <maximumf>, %141, %cst_71 [2] : vector<2x8x8xf32> to vector<2x8xf32>
    %143 = vector.shape_cast %142 : vector<2x8xf32> to vector<2x8x1xf32>
    %144 = vector.broadcast %143 : vector<2x8x1xf32> to vector<2x8x8xf32>
    %145 = arith.subf %141, %144 : vector<2x8x8xf32>
    %146 = math.exp %145 : vector<2x8x8xf32>
    %cst_72 = arith.constant dense<0.000000e+00> : vector<2x8xf32>
    %147 = vector.multi_reduction <add>, %146, %cst_72 [2] : vector<2x8x8xf32> to vector<2x8xf32>
    %148 = vector.shape_cast %147 : vector<2x8xf32> to vector<2x8x1xf32>
    %149 = tpu.reciprocal %148 {approx = true} : vector<2x8x1xf32> -> vector<2x8x1xf32>
    %150 = vector.broadcast %149 : vector<2x8x1xf32> to vector<2x8x8xf32>
    %151 = arith.mulf %146, %150 : vector<2x8x8xf32>
    %152 = arith.truncf %151 : vector<2x8x8xf32> to vector<2x8x8xbf16>
    %153 = arith.truncf %136 : vector<2x8x64xf32> to vector<2x8x64xbf16>
    "tpu.trace_start"() <{level = 10 : i32, message = "bqk,bkd->bqd"}> : () -> ()
    %cst_73 = arith.constant dense<0.000000e+00> : vector<2x8x64xf32>
    %154 = tpu.matmul %152, %153, %cst_73 {dimension_numbers = #tpu.dot_dimension_numbers<[2], [1], [1], [2], [0, 0, 0, 1, 1, 2], [0], [0]>} : vector<2x8x8xbf16>, vector<2x8x64xbf16>, vector<2x8x64xf32> -> vector<2x8x64xf32>
    "tpu.trace_stop"() : () -> ()
    %155 = vector.shape_cast %154 : vector<2x8x64xf32> to vector<16x64xf32>
    %156 = arith.truncf %155 : vector<16x64xf32> to vector<16x64xbf16>
    %c1_74 = arith.constant 1 : index
    %c0_75 = arith.constant 0 : index
    %c0_76 = arith.constant 0 : index
    %157 = vector.load %arg5[%c1_74, %c0_75, %c0_76] : memref<2x64x64xbf16, #tpu.memory_space<vmem>>, vector<1x64x64xbf16>
    %158 = vector.shape_cast %157 : vector<1x64x64xbf16> to vector<64x64xbf16>
    %cst_77 = arith.constant dense<0.000000e+00> : vector<16x64xf32>
    %159 = tpu.matmul %156, %158, %cst_77 {dimension_numbers = #tpu.dot_dimension_numbers<[1], [0], [0], [1], [0, 0, 1, 1], [], []>} : vector<16x64xbf16>, vector<64x64xbf16>, vector<16x64xf32> -> vector<16x64xf32>
    %c1_78 = arith.constant 1 : index
    %c0_79 = arith.constant 0 : index
    %c0_80 = arith.constant 0 : index
    %160 = vector.load %arg6[%c1_78, %c0_79, %c0_80] : memref<2x1x64xf32, #tpu.memory_space<vmem>>, vector<1x1x64xf32>
    %161 = vector.shape_cast %160 : vector<1x1x64xf32> to vector<1x64xf32>
    %162 = vector.broadcast %161 : vector<1x64xf32> to vector<16x64xf32>
    %163 = arith.addf %159, %162 : vector<16x64xf32>
    %164 = arith.addf %122, %163 : vector<16x64xf32>
    %c1_81 = arith.constant 1 : index
    %c0_82 = arith.constant 0 : index
    %c0_83 = arith.constant 0 : index
    %165 = vector.load %arg7[%c1_81, %c0_82, %c0_83] : memref<2x1x64xf32, #tpu.memory_space<vmem>>, vector<1x1x64xf32>
    %166 = vector.shape_cast %165 : vector<1x1x64xf32> to vector<1x64xf32>
    %c1_84 = arith.constant 1 : index
    %c0_85 = arith.constant 0 : index
    %c0_86 = arith.constant 0 : index
    %167 = vector.load %arg8[%c1_84, %c0_85, %c0_86] : memref<2x1x64xf32, #tpu.memory_space<vmem>>, vector<1x1x64xf32>
    %168 = vector.shape_cast %167 : vector<1x1x64xf32> to vector<1x64xf32>
    %cst_87 = arith.constant dense<0.000000e+00> : vector<16xf32>
    %169 = vector.multi_reduction <add>, %164, %cst_87 [1] : vector<16x64xf32> to vector<16xf32>
    %170 = vector.shape_cast %169 : vector<16xf32> to vector<16x1xf32>
    %cst_88 = arith.constant 6.400000e+01 : f32
    %171 = vector.broadcast %cst_88 : f32 to vector<16x1xf32>
    %172 = arith.divf %170, %171 : vector<16x1xf32>
    %173 = vector.broadcast %172 : vector<16x1xf32> to vector<16x64xf32>
    %174 = arith.subf %164, %173 : vector<16x64xf32>
    %175 = arith.mulf %174, %174 : vector<16x64xf32>
    %cst_89 = arith.constant dense<0.000000e+00> : vector<16xf32>
    %176 = vector.multi_reduction <add>, %175, %cst_89 [1] : vector<16x64xf32> to vector<16xf32>
    %177 = vector.shape_cast %176 : vector<16xf32> to vector<16x1xf32>
    %cst_90 = arith.constant 6.400000e+01 : f32
    %178 = vector.broadcast %cst_90 : f32 to vector<16x1xf32>
    %179 = arith.divf %177, %178 : vector<16x1xf32>
    %180 = vector.broadcast %172 : vector<16x1xf32> to vector<16x64xf32>
    %181 = arith.subf %164, %180 : vector<16x64xf32>
    %cst_91 = arith.constant 9.99999974E-6 : f32
    %182 = vector.broadcast %cst_91 : f32 to vector<16x1xf32>
    %183 = arith.addf %179, %182 : vector<16x1xf32>
    %184 = math.rsqrt %183 : vector<16x1xf32>
    %185 = vector.broadcast %184 : vector<16x1xf32> to vector<16x64xf32>
    %186 = arith.mulf %181, %185 : vector<16x64xf32>
    %187 = vector.broadcast %166 : vector<1x64xf32> to vector<16x64xf32>
    %188 = arith.mulf %186, %187 : vector<16x64xf32>
    %189 = vector.broadcast %168 : vector<1x64xf32> to vector<16x64xf32>
    %190 = arith.addf %188, %189 : vector<16x64xf32>
    %191 = arith.truncf %190 : vector<16x64xf32> to vector<16x64xbf16>
    %c1_92 = arith.constant 1 : index
    %c0_93 = arith.constant 0 : index
    %c0_94 = arith.constant 0 : index
    %192 = vector.load %arg9[%c1_92, %c0_93, %c0_94] : memref<2x64x256xbf16, #tpu.memory_space<vmem>>, vector<1x64x256xbf16>
    %193 = vector.shape_cast %192 : vector<1x64x256xbf16> to vector<64x256xbf16>
    %cst_95 = arith.constant dense<0.000000e+00> : vector<16x256xf32>
    %194 = tpu.matmul %191, %193, %cst_95 {dimension_numbers = #tpu.dot_dimension_numbers<[1], [0], [0], [1], [0, 0, 1, 1], [], []>} : vector<16x64xbf16>, vector<64x256xbf16>, vector<16x256xf32> -> vector<16x256xf32>
    %c1_96 = arith.constant 1 : index
    %c0_97 = arith.constant 0 : index
    %c0_98 = arith.constant 0 : index
    %195 = vector.load %arg10[%c1_96, %c0_97, %c0_98] : memref<2x1x256xf32, #tpu.memory_space<vmem>>, vector<1x1x256xf32>
    %196 = vector.shape_cast %195 : vector<1x1x256xf32> to vector<1x256xf32>
    %197 = vector.broadcast %196 : vector<1x256xf32> to vector<16x256xf32>
    %198 = arith.addf %194, %197 : vector<16x256xf32>
    %cst_99 = arith.constant 0.000000e+00 : f32
    %199 = vector.broadcast %cst_99 : f32 to vector<16x256xf32>
    %200 = arith.maximumf %198, %199 : vector<16x256xf32>
    %201 = arith.truncf %200 : vector<16x256xf32> to vector<16x256xbf16>
    %c1_100 = arith.constant 1 : index
    %c0_101 = arith.constant 0 : index
    %c0_102 = arith.constant 0 : index
    %202 = vector.load %arg11[%c1_100, %c0_101, %c0_102] : memref<2x256x64xbf16, #tpu.memory_space<vmem>>, vector<1x256x64xbf16>
    %203 = vector.shape_cast %202 : vector<1x256x64xbf16> to vector<256x64xbf16>
    %cst_103 = arith.constant dense<0.000000e+00> : vector<16x64xf32>
    %204 = tpu.matmul %201, %203, %cst_103 {dimension_numbers = #tpu.dot_dimension_numbers<[1], [0], [0], [1], [0, 0, 1, 1], [], []>} : vector<16x256xbf16>, vector<256x64xbf16>, vector<16x64xf32> -> vector<16x64xf32>
    %c1_104 = arith.constant 1 : index
    %c0_105 = arith.constant 0 : index
    %c0_106 = arith.constant 0 : index
    %205 = vector.load %arg12[%c1_104, %c0_105, %c0_106] : memref<2x1x64xf32, #tpu.memory_space<vmem>>, vector<1x1x64xf32>
    %206 = vector.shape_cast %205 : vector<1x1x64xf32> to vector<1x64xf32>
    %207 = vector.broadcast %206 : vector<1x64xf32> to vector<16x64xf32>
    %208 = arith.addf %204, %207 : vector<16x64xf32>
    %209 = arith.addf %190, %208 : vector<16x64xf32>
    %c1_107 = arith.constant 1 : index
    %c0_108 = arith.constant 0 : index
    %c0_109 = arith.constant 0 : index
    %210 = vector.load %arg13[%c1_107, %c0_108, %c0_109] : memref<2x1x64xf32, #tpu.memory_space<vmem>>, vector<1x1x64xf32>
    %211 = vector.shape_cast %210 : vector<1x1x64xf32> to vector<1x64xf32>
    %c1_110 = arith.constant 1 : index
    %c0_111 = arith.constant 0 : index
    %c0_112 = arith.constant 0 : index
    %212 = vector.load %arg14[%c1_110, %c0_111, %c0_112] : memref<2x1x64xf32, #tpu.memory_space<vmem>>, vector<1x1x64xf32>
    %213 = vector.shape_cast %212 : vector<1x1x64xf32> to vector<1x64xf32>
    %cst_113 = arith.constant dense<0.000000e+00> : vector<16xf32>
    %214 = vector.multi_reduction <add>, %209, %cst_113 [1] : vector<16x64xf32> to vector<16xf32>
    %215 = vector.shape_cast %214 : vector<16xf32> to vector<16x1xf32>
    %cst_114 = arith.constant 6.400000e+01 : f32
    %216 = vector.broadcast %cst_114 : f32 to vector<16x1xf32>
    %217 = arith.divf %215, %216 : vector<16x1xf32>
    %218 = vector.broadcast %217 : vector<16x1xf32> to vector<16x64xf32>
    %219 = arith.subf %209, %218 : vector<16x64xf32>
    %220 = arith.mulf %219, %219 : vector<16x64xf32>
    %cst_115 = arith.constant dense<0.000000e+00> : vector<16xf32>
    %221 = vector.multi_reduction <add>, %220, %cst_115 [1] : vector<16x64xf32> to vector<16xf32>
    %222 = vector.shape_cast %221 : vector<16xf32> to vector<16x1xf32>
    %cst_116 = arith.constant 6.400000e+01 : f32
    %223 = vector.broadcast %cst_116 : f32 to vector<16x1xf32>
    %224 = arith.divf %222, %223 : vector<16x1xf32>
    %225 = vector.broadcast %217 : vector<16x1xf32> to vector<16x64xf32>
    %226 = arith.subf %209, %225 : vector<16x64xf32>
    %cst_117 = arith.constant 9.99999974E-6 : f32
    %227 = vector.broadcast %cst_117 : f32 to vector<16x1xf32>
    %228 = arith.addf %224, %227 : vector<16x1xf32>
    %229 = math.rsqrt %228 : vector<16x1xf32>
    %230 = vector.broadcast %229 : vector<16x1xf32> to vector<16x64xf32>
    %231 = arith.mulf %226, %230 : vector<16x64xf32>
    %232 = vector.broadcast %211 : vector<1x64xf32> to vector<16x64xf32>
    %233 = arith.mulf %231, %232 : vector<16x64xf32>
    %234 = vector.broadcast %213 : vector<1x64xf32> to vector<16x64xf32>
    %235 = arith.addf %233, %234 : vector<16x64xf32>
    %c0_118 = arith.constant 0 : index
    %c0_119 = arith.constant 0 : index
    %236 = vector.load %arg15[%c0_118, %c0_119] : memref<1x64xf32, #tpu.memory_space<vmem>>, vector<1x64xf32>
    %c0_120 = arith.constant 0 : index
    %c0_121 = arith.constant 0 : index
    %237 = vector.load %arg16[%c0_120, %c0_121] : memref<1x64xf32, #tpu.memory_space<vmem>>, vector<1x64xf32>
    %cst_122 = arith.constant dense<0.000000e+00> : vector<16xf32>
    %238 = vector.multi_reduction <add>, %235, %cst_122 [1] : vector<16x64xf32> to vector<16xf32>
    %239 = vector.shape_cast %238 : vector<16xf32> to vector<16x1xf32>
    %cst_123 = arith.constant 6.400000e+01 : f32
    %240 = vector.broadcast %cst_123 : f32 to vector<16x1xf32>
    %241 = arith.divf %239, %240 : vector<16x1xf32>
    %242 = vector.broadcast %241 : vector<16x1xf32> to vector<16x64xf32>
    %243 = arith.subf %235, %242 : vector<16x64xf32>
    %244 = arith.mulf %243, %243 : vector<16x64xf32>
    %cst_124 = arith.constant dense<0.000000e+00> : vector<16xf32>
    %245 = vector.multi_reduction <add>, %244, %cst_124 [1] : vector<16x64xf32> to vector<16xf32>
    %246 = vector.shape_cast %245 : vector<16xf32> to vector<16x1xf32>
    %cst_125 = arith.constant 6.400000e+01 : f32
    %247 = vector.broadcast %cst_125 : f32 to vector<16x1xf32>
    %248 = arith.divf %246, %247 : vector<16x1xf32>
    %249 = vector.broadcast %241 : vector<16x1xf32> to vector<16x64xf32>
    %250 = arith.subf %235, %249 : vector<16x64xf32>
    %cst_126 = arith.constant 9.99999974E-6 : f32
    %251 = vector.broadcast %cst_126 : f32 to vector<16x1xf32>
    %252 = arith.addf %248, %251 : vector<16x1xf32>
    %253 = math.rsqrt %252 : vector<16x1xf32>
    %254 = vector.broadcast %253 : vector<16x1xf32> to vector<16x64xf32>
    %255 = arith.mulf %250, %254 : vector<16x64xf32>
    %256 = vector.broadcast %236 : vector<1x64xf32> to vector<16x64xf32>
    %257 = arith.mulf %255, %256 : vector<16x64xf32>
    %258 = vector.broadcast %237 : vector<1x64xf32> to vector<16x64xf32>
    %259 = arith.addf %257, %258 : vector<16x64xf32>
    %260 = vector.shape_cast %259 : vector<16x64xf32> to vector<2x8x64xf32>
    %cst_127 = arith.constant dense<0xFF800000> : vector<2x64xf32>
    %261 = vector.multi_reduction <maximumf>, %260, %cst_127 [1] : vector<2x8x64xf32> to vector<2x64xf32>
    %262 = arith.truncf %261 : vector<2x64xf32> to vector<2x64xbf16>
    %c0_128 = arith.constant 0 : index
    %c0_129 = arith.constant 0 : index
    %263 = vector.load %arg17[%c0_128, %c0_129] : memref<64x128xbf16, #tpu.memory_space<vmem>>, vector<64x128xbf16>
    %cst_130 = arith.constant dense<0.000000e+00> : vector<2x128xf32>
    %264 = tpu.matmul %262, %263, %cst_130 {dimension_numbers = #tpu.dot_dimension_numbers<[1], [0], [0], [1], [0, 0, 1, 1], [], []>} : vector<2x64xbf16>, vector<64x128xbf16>, vector<2x128xf32> -> vector<2x128xf32>
    %c0_131 = arith.constant 0 : index
    %c0_132 = arith.constant 0 : index
    %265 = vector.load %arg18[%c0_131, %c0_132] : memref<1x128xf32, #tpu.memory_space<vmem>>, vector<1x128xf32>
    %266 = vector.broadcast %265 : vector<1x128xf32> to vector<2x128xf32>
    %267 = arith.addf %264, %266 : vector<2x128xf32>
    %c0_133 = arith.constant 0 : index
    %c0_134 = arith.constant 0 : index
    %268 = vector.load %arg19[%c0_133, %c0_134] : memref<2x128xf32, #tpu.memory_space<vmem>>, vector<2x128xf32>
    tpu.vector_store %arg19[%c0_133, %c0_134], %267 {strides = array<i32>} : memref<2x128xf32, #tpu.memory_space<vmem>>, vector<2x128xf32>,
    return
  }
}

</mosaic_0001>

<bundles_post_ra>
// kernel: tpu_custom_call.1
= control target key start
LH: loop header
LB: loop body
LE: loop exit
PB: predicated region body
PF: predicated region fallthrough
CT: control target
= control target key end

     0   :  { %s2940_s0 = inlined_call_operand.vmem [shape: f32[2,8,8], index: 0, kind: input, shape index: {}]   ;;  %s2941_s1 = inlined_call_operand.vmem [shape: bf16[8,64], index: 1, kind: input, shape index: {}]   ;;  %s2942_s2 = inlined_call_operand.vmem [shape: f32[1,64], index: 2, kind: input, shape index: {}]   ;;  %s2943_s3 = inlined_call_operand.vmem [shape: bf16[2,64,192], index: 3, kind: input, shape index: {}]   ;;  %s2944_s4 = inlined_call_operand.vmem [shape: f32[2,1,192], index: 4, kind: input, shape index: {}]   ;;  %s2945_s5 = inlined_call_operand.vmem [shape: bf16[2,64,64], index: 5, kind: input, shape index: {}]   ;;  %s2946_s6 = inlined_call_operand.vmem [shape: f32[2,1,64], index: 6, kind: input, shape index: {}]   ;;  %s2947_s7 = inlined_call_operand.vmem [shape: f32[2,1,64], index: 7, kind: input, shape index: {}]   ;;  %s2948_s8 = inlined_call_operand.vmem [shape: f32[2,1,64], index: 8, kind: input, shape index: {}]   ;;  %s2949_s9 = inlined_call_operand.vmem [shape: bf16[2,64,256], index: 9, kind: input, shape index: {}]   ;;  %s2950_s10 = inlined_call_operand.vmem [shape: f32[2,1,256], index: 10, kind: input, shape index: {}]   ;;  %s2951_s11 = inlined_call_operand.vmem [shape: bf16[2,256,64], index: 11, kind: input, shape index: {}]   ;;  %s2952_s12 = inlined_call_operand.vmem [shape: f32[2,1,64], index: 12, kind: input, shape index: {}]   ;;  %s2953_s13 = inlined_call_operand.vmem [shape: f32[2,1,64], index: 13, kind: input, shape index: {}]   ;;  %s2954_s14 = inlined_call_operand.vmem [shape: f32[2,1,64], index: 14, kind: input, shape index: {}]   ;;  %s2955_s15 = inlined_call_operand.vmem [shape: f32[1,64], index: 15, kind: input, shape index: {}]   ;;  %s2956_s16 = inlined_call_operand.vmem [shape: f32[1,64], index: 16, kind: input, shape index: {}]   ;;  %s2957_s17 = inlined_call_operand.vmem [shape: bf16[64,128], index: 17, kind: input, shape index: {}]   ;;  %s2958_s18 = inlined_call_operand.vmem [shape: f32[1,128], index: 18, kind: input, shape index: {}]   ;;  %s2959_s19 = inlined_call_operand.hbm [shape: f32[2,128], index: 19, kind: output, shape index: {}]  }
   0x1   :  { %2962 = sst [smem:[#allocation5_spill]] %s2940_s0 }
   0x2   :  { %2963 = sst [smem:[#allocation6_spill]] %s2941_s1 }
   0x3   :  { %2964 = sst [smem:[#allocation7_spill]] %s2942_s2 }
   0x4   :  { %2965 = sst [smem:[#allocation8_spill]] %s2943_s3 }
   0x5   :  { %s2966_s20 = sld [smem:[#allocation6_spill]]  ;;  %vm79_vm0 = vcmask 1043456   ;;  %s2967_s22 = sld [smem:[#allocation5_spill]]  ;;  %v2384_v2 = vmov 0.0   ;;  %vm2385_vm1 = vmmov 0   ;;  %vm75_vm2 = vcmask 64512  }
   0x6   :  { %2137 = vmatprep.subr.bf16.mxu0 %v2384_v2  ;;  %2139 = vmatprep.mubr.msk.bf16.mxu0 %vm2385_vm1, %v2384_v2  ;;  %s2968_s3 = sld [smem:[#allocation8_spill]] }
   0xb   :  { %v67_v0 = vld [vmem:[%s2966_s20] sm:$0xf]  ;;  %v65_v4 = vld [vmem:[%s2967_s22 + $0x8] sm:$0xff] }
   0xc   :  { %v64_v1 = vld [vmem:[%s2967_s22] sm:$0xff]  ;;  %v81_v3 = vsel %vm79_vm0, %v67_v0, 0  ;;  %v2235_v8 = vld [vmem:[%s2968_s3 + $0x14] ss:$8 sps:$4 sm:$0xff]   ;;  %v2237_v9 = vld [vmem:[%s2968_s3 + $0x10] ss:$8 sps:$4 sm:$0xff]  }
   0xd   :  { %2138 = vmatpush3.bf16.msra.mxu0 %v81_v3  ;;  %v66_v5 = vpack.c.bf16 %v65_v4, %v64_v1  ;;  %v2232_v6 = vld [vmem:[%s2968_s3 + $0x4] ss:$8 sps:$4 sm:$0xff]   ;;  %v2234_v7 = vld [vmem:[%s2968_s3] ss:$8 sps:$4 sm:$0xff]  }
   0xe   :  { %2143 = vmatprep.subr.bf16.mxu0 %v2384_v2  ;;  %191 = vmatprep.subr.bf16.mxu1 %v2232_v6 }
   0xf   :  { %192 = vmatpush1.bf16.msra.mxu1 %v2234_v7 }
  0x10   :  { %2140 = vmatmul.mubr.msk.bf16.vlgmr.msra.gmra.mrb[0].mxu0 %vm75_vm2, %v66_v5  ;;  %193 = vmatprep.subr.bf16.mxu1 %v2235_v8 }
  0x11   :  { %2145 = vmatprep.mubr.msk.bf16.mxu0 %vm2385_vm1, %v2384_v2 }
  0x13   :  { %194 = vmatpush1.bf16.msra.mxu1 %v2237_v9 }
  0x14   :  { %24 = vsyncpa [#allocation3], 0  ;;  %v2238_v10 = vld [vmem:[%s2968_s3 + $0x24] ss:$8 sps:$4 sm:$0xff]   ;;  %v2240_v11 = vld [vmem:[%s2968_s3 + $0x20] ss:$8 sps:$4 sm:$0xff]   ;;  %v137_v25 = vlaneseq }
  0x15   :  { %195 = vmatprep.subr.bf16.mxu1 %v2238_v10  ;;  %v2241_v12 = vld [vmem:[%s2968_s3 + $0x34] ss:$8 sps:$4 sm:$0xff]   ;;  %v2243_v13 = vld [vmem:[%s2968_s3 + $0x30] ss:$8 sps:$4 sm:$0xff]   ;;  %v2386_v14 = vmov 0   ;;  %s2969_s28 = sld [smem:[#allocation7_spill]] }
  0x16   :  { %223 = vmatprep.mubr.bf16.mxu1 %v2386_v14  ;;  %vm187_vm3 = vcmask 523264   ;;  %v138_v26 = vshrl.u32 %v137_v25, 7  ;;  %v135_v28 = vld [vmem:[%s2944_s4] sm:$0x3]  ;;  %s2387_s30 = smov 64   ;;  %v2247_v25 = vld [vmem:[%s2945_s5 + $0x18] sm:$0xff]  }
  0x17   :  { %196 = vmatpush1.bf16.msra.mxu1 %v2240_v11  ;;  %v2244_v7 = vld [vmem:[%s2945_s5] sm:$0xff]   ;;  %vm1803_vm4 = vcmask 1041409   ;;  %s2388_s25 = smov [#allocation2]  }
  0x18   :  { %197 = vmatprep.subr.bf16.mxu1 %v2241_v12  ;;  %v2548_v27 = vsub.s32 0, %v138_v26  ;;  %v2554_v30 = vsub.s32 1, %v138_v26  ;;  %s1880_s26 = sshll.u32 %s2388_s25, 4  ;;  %s1881_s26 = int_to_ptr.vmem [resolvable:$true] %s1880_s26 }
  0x19   :  { %p2365_p1 = scmp.lt.s32.totalorder %s1881_s26, %s1881_s26 }
  0x1a   :  { %v140_v29 = vrot.slane %v135_v28, %v2548_v27  ;;  %v144_v34 = vrot.slane %v135_v28, %v2554_v30 }
  0x1b   :  { %198 = vmatpush1.bf16.msra.mxu1 %v2243_v13  ;;  %v1888_v15 = vld [vmem:[%s2969_s28] ss:$0 sm:$0xff] }
  0x1c   :  { %2167 = vmatprep.subr.bf16.mxu1 %v2384_v2 }
  0xe3   :  { %v117_v16 = vpop.f32.mrb[0].mxu0 }
  0xe4   :  { %v2535_v17 = vadd.f32 %v1888_v15, %v117_v16  ;;  %v2141_v18 = vpop.f32.mrb[1].mxu0 }
  0xe5   :  { %v120_v19 = vpop.f32.mrb[2].mxu0 }
  0xe6   :  { %v2537_v20 = vadd.f32 %v1888_v15, %v120_v19  ;;  %v2142_v21 = vpop.f32.mrb[3].mxu0  ;;  %v124_v22 = vmax.f32 %v2535_v17, 0.0 }
  0xe7   :  { %v2245_v21 = vld [vmem:[%s2945_s5 + $0x8] sm:$0xff]  }
  0xe8   :  { %v125_v23 = vmax.f32 %v2537_v20, 0.0  ;;  %v2250_v20 = vld [vmem:[%s2949_s9 + $0x4] ss:$8 sps:$4 sm:$0xff]  }
  0xea   :  { %v126_v24 = vpack.c.bf16 %v125_v23, %v124_v22 }
  0xec   :  { %1898 = vmatmul.mubr.msk.bf16.vlgmr.msra.gmra.mrb[0].mxu1 %vm187_vm3, %v126_v24  ;;  %v2246_v24 = vld [vmem:[%s2945_s5 + $0x10] sm:$0xff]  }
  0xed   :  { %2175 = vmatprep.mubr.msk.bf16.mxu1 %vm2385_vm1, %v2384_v2  ;;  %2168 = vmatpush3.bf16.msra.mxu1 %v2244_v7  ;;  %v2268_v7 = vld [vmem:[%s2951_s11 + $0x60] sm:$0xff]  }
  0xee   :  { %2169 = vmatprep.subr.bf16.mxu1 %v2384_v2 }
  0xf1   :  { %2170 = vmatpush3.bf16.msra.mxu1 %v2245_v21  ;;  %v1909_v21 = vld [vmem:[%s2947_s7] ss:$0 sm:$0xff] }
  0xf2   :  { %2171 = vmatprep.subr.bf16.mxu1 %v2384_v2 }
  0xf5   :  { %2172 = vmatpush3.bf16.msra.mxu1 %v2246_v24 }
  0xf6   :  { %2173 = vmatprep.subr.bf16.mxu1 %v2384_v2 }
  0xf9   :  { %2174 = vmatpush3.bf16.msra.mxu1 %v2247_v25 }
 0x1bf   :  { %v225_v31 = vpop.f32.mrb[0].mxu1 }
 0x1c0   :  { %v226_v32 = vadd.f32 %v225_v31, %v140_v29  ;;  %v227_v33 = vpop.f32.mrb[1].mxu1 }
 0x1c1   :  { %v229_v35 = vpop.f32.mrb[2].mxu1  ;;  %v228_v44 = vadd.f32 %v227_v33, %v144_v34 }
 0x1c2   :  { %v234_v36 = vpack.c.bf16 %v226_v32, %v226_v32  ;;  %v230_v37 = vadd.f32 %v229_v35, %v140_v29  ;;  %v231_v38 = vpop.f32.mrb[3].mxu1 }
 0x1c3   :  { %v232_v39 = vadd.f32 %v231_v38, %v144_v34  ;;  %v360_v46 = vpack.c.bf16 %v228_v44, %v228_v44 }
 0x1c4   :  { %237 = vrot.lane.b32.xlu0 %v234_v36, %s2387_s30  ;;  %v235_v40 = vpack.c.bf16 %v230_v37, %v230_v37  ;;  %v1903_v37 = vld [vmem:[%s2946_s6] ss:$0 sm:$0xff] }
 0x1c5   :  { %v366_v47 = vsel %vm79_vm0, %v360_v46, 0  ;;  %v361_v11 = vpack.c.bf16 %v232_v39, %v232_v39 }
 0x1c7   :  { %v412_v15 = vsel %vm79_vm0, %v361_v11, 0 }
 0x1c8   :  { %286 = vrot.lane.b32.xlu0 %v235_v40, %s2387_s30 }
 0x236   :  { %v238_v41 = vpop.permute.xlu0 %237 }
 0x237   :  { %v243_v42 = vsel %vm187_vm3, %v238_v41, 0 }
 0x238   :  { %2144 = vmatpush3.bf16.xpose.msra.mxu0 %v243_v42 }
 0x239   :  { %2149 = vmatprep.subr.bf16.mxu0 %v2384_v2 }
 0x23a   :  { %v287_v43 = vpop.permute.xlu0 %286 }
 0x23b   :  { %v292_v45 = vsel %vm187_vm3, %v287_v43, 0 }
 0x23f   :  { %2146 = vmatmul.mubr.msk.bf16.vlgmr.msra.gmra.mrb[4].mxu0 %vm187_vm3, %v234_v36 }
 0x240   :  { %2150 = vmatpush3.bf16.xpose.msra.mxu0 %v292_v45  ;;  %2151 = vmatprep.mubr.msk.bf16.mxu0 %vm2385_vm1, %v2384_v2 }
 0x241   :  { %2155 = vmatprep.subr.bf16.mxu0 %v2384_v2 }
 0x247   :  { %2152 = vmatmul.mubr.msk.bf16.vlgmr.msra.gmra.mrb[8].mxu0 %vm187_vm3, %v235_v40 }
 0x248   :  { %2156 = vmatpush3.bf16.msra.mxu0 %v366_v47  ;;  %2157 = vmatprep.mubr.msk.bf16.mxu0 %vm2385_vm1, %v2384_v2 }
 0x249   :  { %2161 = vmatprep.subr.bf16.mxu0 %v2384_v2 }
 0x312   :  { %v279_v48 = vpop.f32.mrb[4].mxu0 }
 0x313   :  { %v334_v49 = vmul.f32 0.125, %v279_v48  ;;  %v2147_v50 = vpop.f32.mrb[5].mxu0 }
 0x314   :  { %v282_v51 = vpop.f32.mrb[6].mxu0 }
 0x315   :  { %v2148_v52 = vpop.f32.mrb[7].mxu0  ;;  %v336_v53 = vsel %vm75_vm2, %v334_v49, -inf }
 0x316   :  { %337 = vmax.xlane.f32.xlu1 %v336_v53 }
 0x31a   :  { %v328_v54 = vpop.f32.mrb[8].mxu0 }
 0x31b   :  { %v335_v55 = vmul.f32 0.125, %v328_v54  ;;  %v2153_v56 = vpop.f32.mrb[9].mxu0 }
 0x31c   :  { %v331_v57 = vpop.f32.mrb[10].mxu0  ;;  %v2253_v56 = vld [vmem:[%s2949_s9 + $0x14] ss:$8 sps:$4 sm:$0xff]  }
 0x31d   :  { %v2154_v58 = vpop.f32.mrb[11].mxu0  ;;  %v339_v59 = vsel %vm75_vm2, %v335_v55, -inf  ;;  %v2251_v57 = vld [vmem:[%s2949_s9 + $0x10] ss:$8 sps:$4 sm:$0xff]  }
 0x31e   :  { %340 = vmax.xlane.f32.xlu1 %v339_v59  ;;  %v2256_v58 = vld [vmem:[%s2949_s9 + $0x24] ss:$8 sps:$4 sm:$0xff]   ;;  %v2254_v59 = vld [vmem:[%s2949_s9 + $0x20] ss:$8 sps:$4 sm:$0xff]  }
 0x3a3   :  { %v338_v60 = vpop.xlane.xlu1 %337 }
 0x3a4   :  { %v342_v61 = vsub.f32 %v334_v49, %v338_v60  ;;  %v2257_v60 = vld [vmem:[%s2949_s9 + $0x30] ss:$8 sps:$4 sm:$0xff]  }
 0x3a6   :  { %v344_v62 = vmul.f32 1.442695, %v342_v61  ;;  %v2259_v61 = vld [vmem:[%s2949_s9 + $0x34] ss:$8 sps:$4 sm:$0xff]  }
 0x3a8   :  { %2324 = vpow2.f32 %v344_v62  ;;  %v2260_v62 = vld [vmem:[%s2951_s11 + $0x40] sm:$0xff]  }
 0x3a9   :  { %2075 = vmatprep.subr.bf16.mxu1 %v2260_v62 }
 0x3ab   :  { %v341_v63 = vpop.xlane.xlu1 %340 }
 0x3ac   :  { %v343_v0 = vsub.f32 %v335_v55, %v341_v63  ;;  %v2261_v63 = vld [vmem:[%s2951_s11] sm:$0xff]  }
 0x3ae   :  { %v346_v1 = vmul.f32 1.442695, %v343_v0  ;;  %v2262_v0 = vld [vmem:[%s2951_s11 + $0x48] sm:$0xff]  }
 0x3b0   :  { %2326 = vpow2.f32 %v346_v1  ;;  %v2263_v1 = vld [vmem:[%s2951_s11 + $0x8] sm:$0xff]  }
 0x3b2   :  { %v2325_v3 = vpop.eup %2324 }
 0x3b3   :  { %v348_v4 = vsel %vm75_vm2, %v2325_v3, 0.0 }
 0x3b4   :  { %349 = vadd.xlane.f32.xlu0 %v348_v4  ;;  %v2265_v4 = vld [vmem:[%s2951_s11 + $0x10] sm:$0xff]  }
 0x3ba   :  { %v2327_v5 = vpop.eup %2326 }
 0x3bb   :  { %v351_v6 = vsel %vm75_vm2, %v2327_v5, 0.0 }
 0x3bc   :  { %352 = vadd.xlane.f32.xlu1 %v351_v6  ;;  %v2267_v6 = vld [vmem:[%s2951_s11 + $0x18] sm:$0xff]  }
 0x441   :  { %v350_v8 = vpop.xlane.xlu0 %349 }
 0x442   :  { %2328 = vrcp.f32 %v350_v8  ;;  %v2269_v8 = vld [vmem:[%s2951_s11 + $0x20] sm:$0xff]  }
 0x449   :  { %v353_v9 = vpop.xlane.xlu1 %352 }
 0x44a   :  { %2330 = vrcp.f32 %v353_v9  ;;  %v2270_v9 = vld [vmem:[%s2951_s11 + $0x68] sm:$0xff]  }
 0x44c   :  { %v2329_v10 = vpop.eup %2328 }
 0x44d   :  { %v356_v12 = vmul.f32 %v2329_v10, %v2325_v3  ;;  %v2264_v3 = vld [vmem:[%s2951_s11 + $0x50] sm:$0xff]  }
 0x44f   :  { %v358_v13 = vpack.c.bf16 %v356_v12, %v356_v12 }
 0x451   :  { %2158 = vmatmul.mubr.msk.bf16.vlgmr.msra.gmra.mrb[12].mxu0 %vm75_vm2, %v358_v13 }
 0x452   :  { %2162 = vmatpush3.bf16.msra.mxu0 %v412_v15  ;;  %2163 = vmatprep.mubr.msk.bf16.mxu0 %vm2385_vm1, %v2384_v2 }
 0x453   :  { %649 = vmatprep.subr.bf16.mxu0 %v2250_v20 }
 0x454   :  { %v2331_v16 = vpop.eup %2330 }
 0x455   :  { %v357_v18 = vmul.f32 %v2331_v16, %v2327_v5  ;;  %v2266_v5 = vld [vmem:[%s2951_s11 + $0x58] sm:$0xff]  }
 0x457   :  { %v359_v19 = vpack.c.bf16 %v357_v18, %v357_v18 }
 0x459   :  { %2164 = vmatmul.mubr.msk.bf16.vlgmr.msra.gmra.mrb[16].mxu0 %vm75_vm2, %v359_v19 }
 0x45a   :  { %681 = vmatprep.mubr.bf16.mxu0 %v2386_v14 }
 0x524   :  { %v402_v26 = vpop.f32.mrb[12].mxu0 }
 0x525   :  { %v2159_v28 = vpop.f32.mrb[13].mxu0 }
 0x526   :  { %v405_v29 = vpop.f32.mrb[14].mxu0  ;;  %v1910_v28 = vld [vmem:[%s2948_s8] ss:$0 sm:$0xff] }
 0x527   :  { %v2160_v31 = vpop.f32.mrb[15].mxu0 }
 0x52c   :  { %v448_v32 = vpop.f32.mrb[16].mxu0 }
 0x52d   :  { %v454_v33 = vpack.c.bf16 %v448_v32, %v402_v26  ;;  %v2165_v34 = vpop.f32.mrb[17].mxu0 }
 0x52e   :  { %v451_v35 = vpop.f32.mrb[18].mxu0  ;;  %v2271_v34 = vld [vmem:[%s2951_s11 + $0x28] sm:$0xff]  }
 0x52f   :  { %v2166_v36 = vpop.f32.mrb[19].mxu0  ;;  %2176 = vmatmul.mubr.msk.bf16.vlgmr.msra.gmra.mrb[4].mxu1 %vm187_vm3, %v454_v33  ;;  %v2272_v35 = vld [vmem:[%s2951_s11 + $0x70] sm:$0xff]  }
 0x530   :  { %2076 = vmatpush3.bf16.msra.mxu1 %v2261_v63  ;;  %v2273_v36 = vld [vmem:[%s2951_s11 + $0x30] sm:$0xff]  }
 0x531   :  { %2077 = vmatprep.subr.bf16.mxu1 %v2262_v0 }
 0x534   :  { %2078 = vmatpush3.bf16.msra.mxu1 %v2263_v1 }
 0x535   :  { %2079 = vmatprep.subr.bf16.mxu1 %v2264_v3 }
 0x538   :  { %2080 = vmatpush3.bf16.msra.mxu1 %v2265_v4 }
 0x539   :  { %2081 = vmatprep.subr.bf16.mxu1 %v2266_v5 }
 0x53c   :  { %2082 = vmatpush3.bf16.msra.mxu1 %v2267_v6 }
 0x53d   :  { %2083 = vmatprep.subr.bf16.mxu1 %v2268_v7 }
 0x540   :  { %2084 = vmatpush3.bf16.msra.mxu1 %v2269_v8 }
 0x541   :  { %2085 = vmatprep.subr.bf16.mxu1 %v2270_v9 }
 0x544   :  { %2086 = vmatpush3.bf16.msra.mxu1 %v2271_v34 }
 0x545   :  { %2087 = vmatprep.subr.bf16.mxu1 %v2272_v35  ;;  %v1937_v35 = vld [vmem:[%s2953_s13] ss:$0 sm:$0xff] }
 0x548   :  { %2088 = vmatpush3.bf16.msra.mxu1 %v2273_v36 }
 0x602   :  { %v531_v38 = vpop.f32.mrb[4].mxu1 }
 0x603   :  { %v532_v39 = vadd.f32 %v1903_v37, %v531_v38  ;;  %v2177_v40 = vpop.f32.mrb[5].mxu1  ;;  %v2275_v38 = vld [vmem:[%s2951_s11 + $0x38] sm:$0xff]  }
 0x604   :  { %v534_v41 = vpop.f32.mrb[6].mxu1 }
 0x605   :  { %v535_v42 = vadd.f32 %v1903_v37, %v534_v41  ;;  %v2178_v43 = vpop.f32.mrb[7].mxu1  ;;  %v538_v44 = vadd.f32 %v532_v39, %v124_v22  ;;  %v2274_v37 = vld [vmem:[%s2951_s11 + $0x78] sm:$0xff]   ;;  %v594_v39 = vld [vmem:[%s2950_s10] sm:$0x3] }
 0x606   :  { %2089 = vmatprep.subr.bf16.mxu1 %v2274_v37  ;;  %v599_v40 = vrot.slane %v594_v39, %v2548_v27  ;;  %v603_v41 = vrot.slane %v594_v39, %v2554_v30  ;;  %v1938_v39 = vld [vmem:[%s2954_s14] ss:$0 sm:$0xff] }
 0x607   :  { %v542_v45 = vsel %vm187_vm3, %v538_v44, 0.0  ;;  %v539_v46 = vadd.f32 %v535_v42, %v125_v23  ;;  %v2248_v23 = vld [vmem:[%s2949_s9] ss:$8 sps:$4 sm:$0xff]   ;;  %2090 = vmatpush3.bf16.msra.mxu1 %v2275_v38 }
 0x608   :  { %543 = vadd.xlane.f32.xlu1 %v542_v45  ;;  %650 = vmatpush1.bf16.msra.mxu0 %v2248_v23 }
 0x609   :  { %v545_v47 = vsel %vm187_vm3, %v539_v46, 0.0  ;;  %651 = vmatprep.subr.bf16.mxu0 %v2253_v56  ;;  %2191 = vmatprep.subr.bf16.mxu1 %v2384_v2 }
 0x60c   :  { %546 = vadd.xlane.f32.xlu1 %v545_v47  ;;  %652 = vmatpush1.bf16.msra.mxu0 %v2251_v57 }
 0x60d   :  { %653 = vmatprep.subr.bf16.mxu0 %v2256_v58 }
 0x610   :  { %654 = vmatpush1.bf16.msra.mxu0 %v2254_v59 }
 0x611   :  { %655 = vmatprep.subr.bf16.mxu0 %v2259_v61 }
 0x614   :  { %656 = vmatpush1.bf16.msra.mxu0 %v2257_v60 }
 0x695   :  { %v544_v48 = vpop.xlane.xlu1 %543 }
 0x696   :  { %v549_v49 = vmul.f32 0.015625, %v544_v48 }
 0x698   :  { %v551_v50 = vsub.f32 %v538_v44, %v549_v49 }
 0x699   :  { %v547_v51 = vpop.xlane.xlu1 %546 }
 0x69a   :  { %v550_v52 = vmul.f32 0.015625, %v547_v51  ;;  %v553_v53 = vmul.f32 %v551_v50, %v551_v50 }
 0x69c   :  { %v552_v54 = vsub.f32 %v539_v46, %v550_v52  ;;  %v555_v55 = vsel %vm187_vm3, %v553_v53, 0.0 }
 0x69d   :  { %556 = vadd.xlane.f32.xlu1 %v555_v55 }
 0x69e   :  { %v554_v17 = vmul.f32 %v552_v54, %v552_v54 }
 0x6a0   :  { %v558_v22 = vsel %vm187_vm3, %v554_v17, 0.0 }
 0x6a1   :  { %559 = vadd.xlane.f32.xlu1 %v558_v22  ;;  %v1920_v22 = vld [vmem:[%s2952_s12] ss:$0 sm:$0xff] }
 0x72a   :  { %v557_v10 = vpop.xlane.xlu1 %556 }
 0x72b   :  { %v561_v11 = vmul.f32 0.015625, %v557_v10 }
 0x72d   :  { %v563_v12 = vadd.f32 1e-05, %v561_v11 }
 0x72e   :  { %v560_v13 = vpop.xlane.xlu1 %559 }
 0x72f   :  { %2332 = vrsqrt.f32 %v563_v12  ;;  %v562_v15 = vmul.f32 0.015625, %v560_v13  ;;  %v2278_v12 = vld [vmem:[%s2968_s3 + $0x44] ss:$8 sps:$4 sm:$0xff]   ;;  %v2276_v13 = vld [vmem:[%s2968_s3 + $0x40] ss:$8 sps:$4 sm:$0xff]  }
 0x730   :  { %986 = vmatprep.subr.bf16.mxu0 %v2278_v12 }
 0x731   :  { %v564_v16 = vadd.f32 1e-05, %v562_v15  ;;  %v2281_v15 = vld [vmem:[%s2968_s3 + $0x54] ss:$8 sps:$4 sm:$0xff]  }
 0x733   :  { %2334 = vrsqrt.f32 %v564_v16  ;;  %v2279_v16 = vld [vmem:[%s2968_s3 + $0x50] ss:$8 sps:$4 sm:$0xff]  }
 0x739   :  { %v2333_v18 = vpop.eup %2332 }
 0x73a   :  { %v567_v19 = vmul.f32 %v2333_v18, %v551_v50  ;;  %v2284_v18 = vld [vmem:[%s2968_s3 + $0x64] ss:$8 sps:$4 sm:$0xff]  }
 0x73c   :  { %v575_v25 = vmul.f32 %v1909_v21, %v567_v19  ;;  %v2282_v19 = vld [vmem:[%s2968_s3 + $0x60] ss:$8 sps:$4 sm:$0xff]  }
 0x73d   :  { %v2335_v24 = vpop.eup %2334 }
 0x73e   :  { %v568_v26 = vmul.f32 %v2335_v24, %v552_v54  ;;  %v583_v31 = vadd.f32 %v1910_v28, %v575_v25  ;;  %v2287_v24 = vld [vmem:[%s2968_s3 + $0x74] ss:$8 sps:$4 sm:$0xff]  }
 0x740   :  { %v576_v29 = vmul.f32 %v1909_v21, %v568_v26  ;;  %v2285_v21 = vld [vmem:[%s2968_s3 + $0x70] ss:$8 sps:$4 sm:$0xff]  }
 0x742   :  { %v584_v32 = vadd.f32 %v1910_v28, %v576_v29 }
 0x744   :  { %v585_v33 = vpack.c.bf16 %v584_v32, %v583_v31 }
 0x746   :  { %1919 = vmatmul.mubr.msk.bf16.vlgmr.msra.gmra.mrb[20].mxu0 %vm187_vm3, %v585_v33 }
 0x747   :  { %1018 = vmatprep.mubr.bf16.mxu0 %v2386_v14  ;;  %987 = vmatpush1.bf16.msra.mxu0 %v2276_v13 }
 0x748   :  { %988 = vmatprep.subr.bf16.mxu0 %v2281_v15 }
 0x74b   :  { %989 = vmatpush1.bf16.msra.mxu0 %v2279_v16 }
 0x74c   :  { %990 = vmatprep.subr.bf16.mxu0 %v2284_v18 }
 0x74f   :  { %991 = vmatpush1.bf16.msra.mxu0 %v2282_v19 }
 0x750   :  { %992 = vmatprep.subr.bf16.mxu0 %v2287_v24 }
 0x753   :  { %993 = vmatpush1.bf16.msra.mxu0 %v2285_v21 }
 0x754   :  { %2179 = vmatprep.subr.bf16.mxu0 %v2384_v2 }
 0x819   :  { %v683_v42 = vpop.f32.mrb[20].mxu0 }
 0x81a   :  { %v684_v43 = vadd.f32 %v683_v42, %v599_v40  ;;  %v685_v44 = vpop.f32.mrb[21].mxu0 }
 0x81b   :  { %v686_v45 = vadd.f32 %v685_v44, %v603_v41  ;;  %v687_v46 = vpop.f32.mrb[22].mxu0  ;;  %v1947_v44 = vld [vmem:[%s2944_s4 + $0x2] sm:$0x3] }
 0x81c   :  { %v688_v47 = vadd.f32 %v687_v46, %v599_v40  ;;  %v689_v48 = vpop.f32.mrb[23].mxu0  ;;  %v692_v50 = vmax.f32 %v684_v43, 0.0  ;;  %v940_v46 = vrot.slane %v1947_v44, %v2554_v30 }
 0x81d   :  { %v690_v49 = vadd.f32 %v689_v48, %v603_v41  ;;  %v693_v52 = vmax.f32 %v686_v45, 0.0  ;;  %v936_v45 = vrot.slane %v1947_v44, %v2548_v27 }
 0x81e   :  { %v694_v51 = vmax.f32 %v688_v47, 0.0 }
 0x81f   :  { %v695_v53 = vmax.f32 %v690_v49, 0.0 }
 0x820   :  { %v696_v54 = vpack.c.bf16 %v694_v51, %v692_v50 }
 0x821   :  { %v697_v55 = vpack.c.bf16 %v695_v53, %v693_v52 }
 0x823   :  { %865 = vmatprep.mubr.bf16.mxu1 %v697_v55 }
 0x824   :  { %866 = vmatmul.mubr.bf16.vlgmr.msra.gmra.mrb[8].mxu1 %v696_v54 }
 0x825   :  { %2193 = vmatprep.mubr.msk.bf16.mxu1 %vm2385_vm1, %v2384_v2 }
 0x8f7   :  { %v2091_v17 = vpop.f32.mrb[8].mxu1 }
 0x8f8   :  { %v2092_v20 = vpop.f32.mrb[9].mxu1 }
 0x8f9   :  { %v2093_v23 = vadd.f32 %v2092_v20, %v2091_v17  ;;  %v2094_v56 = vpop.f32.mrb[10].mxu1 }
 0x8fa   :  { %v2095_v57 = vpop.f32.mrb[11].mxu1 }
 0x8fb   :  { %v868_v58 = vadd.f32 %v2093_v23, %v1920_v22  ;;  %v2096_v59 = vadd.f32 %v2095_v57, %v2094_v56 }
 0x8fd   :  { %v871_v60 = vadd.f32 %v2096_v59, %v1920_v22  ;;  %v874_v61 = vadd.f32 %v868_v58, %v583_v31 }
 0x8ff   :  { %v878_v62 = vsel %vm187_vm3, %v874_v61, 0.0  ;;  %v875_v63 = vadd.f32 %v871_v60, %v584_v32 }
 0x900   :  { %879 = vadd.xlane.f32.xlu1 %v878_v62 }
 0x901   :  { %v881_v0 = vsel %vm187_vm3, %v875_v63, 0.0 }
 0x904   :  { %882 = vadd.xlane.f32.xlu1 %v881_v0 }
 0x98d   :  { %v880_v1 = vpop.xlane.xlu1 %879 }
 0x98e   :  { %v884_v3 = vmul.f32 0.015625, %v880_v1 }
 0x990   :  { %v886_v4 = vsub.f32 %v874_v61, %v884_v3 }
 0x991   :  { %v883_v5 = vpop.xlane.xlu1 %882 }
 0x992   :  { %v885_v6 = vmul.f32 0.015625, %v883_v5  ;;  %v888_v7 = vmul.f32 %v886_v4, %v886_v4 }
 0x994   :  { %v887_v8 = vsub.f32 %v875_v63, %v885_v6  ;;  %v890_v9 = vsel %vm187_vm3, %v888_v7, 0.0 }
 0x995   :  { %891 = vadd.xlane.f32.xlu1 %v890_v9 }
 0x996   :  { %v889_v10 = vmul.f32 %v887_v8, %v887_v8 }
 0x998   :  { %v893_v11 = vsel %vm187_vm3, %v889_v10, 0.0 }
 0x999   :  { %894 = vadd.xlane.f32.xlu0 %v893_v11 }
 0xa22   :  { %v892_v25 = vpop.xlane.xlu1 %891 }
 0xa23   :  { %v896_v26 = vmul.f32 0.015625, %v892_v25 }
 0xa25   :  { %v898_v28 = vadd.f32 1e-05, %v896_v26 }
 0xa26   :  { %v895_v29 = vpop.xlane.xlu0 %894 }
 0xa27   :  { %2336 = vrsqrt.f32 %v898_v28  ;;  %v897_v31 = vmul.f32 0.015625, %v895_v29 }
 0xa29   :  { %v899_v32 = vadd.f32 1e-05, %v897_v31  ;;  %v2288_v31 = vld [vmem:[%s2945_s5 + $0x20] sm:$0xff]  }
 0xa2b   :  { %2338 = vrsqrt.f32 %v899_v32 }
 0xa31   :  { %v2337_v33 = vpop.eup %2336 }
 0xa32   :  { %v902_v34 = vmul.f32 %v2337_v33, %v886_v4 }
 0xa34   :  { %v910_v37 = vmul.f32 %v1937_v35, %v902_v34 }
 0xa35   :  { %v2339_v36 = vpop.eup %2338 }
 0xa36   :  { %v903_v38 = vmul.f32 %v2339_v36, %v887_v8  ;;  %v2734_v41 = vadd.f32 %v1938_v39, %v910_v37  ;;  %v2289_v36 = vld [vmem:[%s2945_s5 + $0x28] sm:$0xff]   ;;  %v2290_v37 = vld [vmem:[%s2945_s5 + $0x30] sm:$0xff]  }
 0xa38   :  { %v911_v40 = vmul.f32 %v1937_v35, %v903_v38  ;;  %v2291_v38 = vld [vmem:[%s2945_s5 + $0x38] sm:$0xff]  }
 0xa3a   :  { %v2736_v42 = vadd.f32 %v1938_v39, %v911_v40 }
 0xa3c   :  { %v920_v43 = vpack.c.bf16 %v2736_v42, %v2734_v41 }
 0xa3e   :  { %1956 = vmatmul.mubr.msk.bf16.vlgmr.msra.gmra.mrb[24].mxu0 %vm187_vm3, %v920_v43 }
 0xa3f   :  { %2181 = vmatprep.mubr.msk.bf16.mxu0 %vm2385_vm1, %v2384_v2 }
 0xb11   :  { %v1020_v47 = vpop.f32.mrb[24].mxu0 }
 0xb12   :  { %v1021_v48 = vadd.f32 %v1020_v47, %v936_v45  ;;  %v1022_v49 = vpop.f32.mrb[25].mxu0 }
 0xb13   :  { %v1023_v50 = vadd.f32 %v1022_v49, %v940_v46  ;;  %v1024_v51 = vpop.f32.mrb[26].mxu0  ;;  %v1970_v49 = vld [vmem:[%s2946_s6 + $0x1] ss:$0 sm:$0xff] }
 0xb14   :  { %v1029_v52 = vpack.c.bf16 %v1021_v48, %v1021_v48  ;;  %v1025_v53 = vadd.f32 %v1024_v51, %v936_v45  ;;  %v1026_v54 = vpop.f32.mrb[27].mxu0 }
 0xb15   :  { %v1155_v55 = vpack.c.bf16 %v1023_v50, %v1023_v50  ;;  %v1027_v17 = vadd.f32 %v1026_v54, %v940_v46 }
 0xb16   :  { %v1030_v22 = vpack.c.bf16 %v1025_v53, %v1025_v53  ;;  %1032 = vrot.lane.b32.xlu1 %v1029_v52, %s2387_s30 }
 0xb17   :  { %v1161_v20 = vsel %vm79_vm0, %v1155_v55, 0  ;;  %v1156_v59 = vpack.c.bf16 %v1027_v17, %v1027_v17 }
 0xb18   :  { %1081 = vrot.lane.b32.xlu0 %v1030_v22, %s2387_s30  ;;  %2192 = vmatpush3.bf16.msra.mxu1 %v1161_v20 }
 0xb19   :  { %2203 = vmatprep.subr.bf16.mxu1 %v2384_v2  ;;  %v1207_v60 = vsel %vm79_vm0, %v1156_v59, 0 }
 0xb88   :  { %v1033_v23 = vpop.permute.xlu1 %1032 }
 0xb89   :  { %v1038_v56 = vsel %vm187_vm3, %v1033_v23, 0 }
 0xb8a   :  { %2180 = vmatpush3.bf16.xpose.msra.mxu0 %v1038_v56  ;;  %v1082_v57 = vpop.permute.xlu0 %1081 }
 0xb8b   :  { %2185 = vmatprep.subr.bf16.mxu0 %v2384_v2  ;;  %v1087_v58 = vsel %vm187_vm3, %v1082_v57, 0 }
 0xb91   :  { %2182 = vmatmul.mubr.msk.bf16.vlgmr.msra.gmra.mrb[28].mxu0 %vm187_vm3, %v1029_v52 }
 0xb92   :  { %2186 = vmatpush3.bf16.xpose.msra.mxu0 %v1087_v58  ;;  %2187 = vmatprep.mubr.msk.bf16.mxu0 %vm2385_vm1, %v2384_v2 }
 0xb93   :  { %2197 = vmatprep.subr.bf16.mxu0 %v2384_v2 }
 0xb99   :  { %2188 = vmatmul.mubr.msk.bf16.vlgmr.msra.gmra.mrb[32].mxu0 %vm187_vm3, %v1030_v22 }
 0xb9a   :  { %2198 = vmatpush3.bf16.msra.mxu0 %v1207_v60  ;;  %2199 = vmatprep.mubr.msk.bf16.mxu0 %vm2385_vm1, %v2384_v2 }
 0xc64   :  { %v1074_v61 = vpop.f32.mrb[28].mxu0 }
 0xc65   :  { %v1129_v62 = vmul.f32 0.125, %v1074_v61  ;;  %v2183_v63 = vpop.f32.mrb[29].mxu0 }
 0xc66   :  { %v1077_v0 = vpop.f32.mrb[30].mxu0 }
 0xc67   :  { %v2184_v1 = vpop.f32.mrb[31].mxu0  ;;  %v1131_v3 = vsel %vm75_vm2, %v1129_v62, -inf }
 0xc68   :  { %1132 = vmax.xlane.f32.xlu1 %v1131_v3  ;;  %v2292_v1 = vld [vmem:[%s2949_s9 + $0x40] ss:$8 sps:$4 sm:$0xff]   ;;  %v2297_v3 = vld [vmem:[%s2949_s9 + $0x54] ss:$8 sps:$4 sm:$0xff]  }
 0xc6c   :  { %v1123_v4 = vpop.f32.mrb[32].mxu0 }
 0xc6d   :  { %v1130_v5 = vmul.f32 0.125, %v1123_v4  ;;  %v2189_v6 = vpop.f32.mrb[33].mxu0  ;;  %v2295_v4 = vld [vmem:[%s2949_s9 + $0x50] ss:$8 sps:$4 sm:$0xff]  }
 0xc6e   :  { %v1126_v7 = vpop.f32.mrb[34].mxu0  ;;  %v2298_v6 = vld [vmem:[%s2949_s9 + $0x60] ss:$8 sps:$4 sm:$0xff]  }
 0xc6f   :  { %v2190_v8 = vpop.f32.mrb[35].mxu0  ;;  %v1134_v9 = vsel %vm75_vm2, %v1130_v5, -inf  ;;  %v2301_v7 = vld [vmem:[%s2949_s9 + $0x70] ss:$8 sps:$4 sm:$0xff]  }
 0xc70   :  { %1135 = vmax.xlane.f32.xlu0 %v1134_v9  ;;  %v2303_v8 = vld [vmem:[%s2949_s9 + $0x74] ss:$8 sps:$4 sm:$0xff]   ;;  %v2304_v9 = vld [vmem:[%s2951_s11 + $0xc0] sm:$0xff]  }
 0xcf5   :  { %v1133_v10 = vpop.xlane.xlu1 %1132 }
 0xcf6   :  { %v1137_v11 = vsub.f32 %v1129_v62, %v1133_v10  ;;  %v2305_v10 = vld [vmem:[%s2951_s11 + $0x80] sm:$0xff]  }
 0xcf8   :  { %v1139_v12 = vmul.f32 1.442695, %v1137_v11  ;;  %v2306_v11 = vld [vmem:[%s2951_s11 + $0xc8] sm:$0xff]  }
 0xcfa   :  { %2340 = vpow2.f32 %v1139_v12  ;;  %v2307_v12 = vld [vmem:[%s2951_s11 + $0x88] sm:$0xff]  }
 0xcfd   :  { %v1136_v13 = vpop.xlane.xlu0 %1135 }
 0xcfe   :  { %v1138_v15 = vsub.f32 %v1130_v5, %v1136_v13  ;;  %v2300_v5 = vld [vmem:[%s2949_s9 + $0x64] ss:$8 sps:$4 sm:$0xff]   ;;  %v2308_v13 = vld [vmem:[%s2951_s11 + $0xd0] sm:$0xff]  }
 0xd00   :  { %v1141_v16 = vmul.f32 1.442695, %v1138_v15  ;;  %v2309_v15 = vld [vmem:[%s2951_s11 + $0x90] sm:$0xff]  }
 0xd02   :  { %2342 = vpow2.f32 %v1141_v16  ;;  %v2310_v16 = vld [vmem:[%s2951_s11 + $0xd8] sm:$0xff]  }
 0xd04   :  { %v2341_v18 = vpop.eup %2340 }
 0xd05   :  { %v1143_v19 = vsel %vm75_vm2, %v2341_v18, 0.0 }
 0xd06   :  { %1144 = vadd.xlane.f32.xlu1 %v1143_v19  ;;  %v2312_v19 = vld [vmem:[%s2951_s11 + $0xe0] sm:$0xff]  }
 0xd0c   :  { %v2343_v21 = vpop.eup %2342 }
 0xd0d   :  { %v1146_v24 = vsel %vm75_vm2, %v2343_v21, 0.0 }
 0xd0e   :  { %1147 = vadd.xlane.f32.xlu0 %v1146_v24  ;;  %v2314_v24 = vld [vmem:[%s2951_s11 + $0xe8] sm:$0xff]  }
 0xd93   :  { %v1145_v25 = vpop.xlane.xlu1 %1144 }
 0xd94   :  { %2344 = vrcp.f32 %v1145_v25 }
 0xd9b   :  { %v1148_v26 = vpop.xlane.xlu0 %1147 }
 0xd9c   :  { %2346 = vrcp.f32 %v1148_v26 }
 0xd9e   :  { %v2345_v28 = vpop.eup %2344 }
 0xd9f   :  { %v1151_v29 = vmul.f32 %v2345_v28, %v2341_v18  ;;  %v2311_v18 = vld [vmem:[%s2951_s11 + $0x98] sm:$0xff]  }
 0xda1   :  { %v1153_v32 = vpack.c.bf16 %v1151_v29, %v1151_v29 }
 0xda3   :  { %2194 = vmatmul.mubr.msk.bf16.vlgmr.msra.gmra.mrb[12].mxu1 %vm75_vm2, %v1153_v32 }
 0xda4   :  { %2204 = vmatpush3.bf16.msra.mxu1 %v2288_v31  ;;  %2211 = vmatprep.mubr.msk.bf16.mxu1 %vm2385_vm1, %v2384_v2 }
 0xda5   :  { %2205 = vmatprep.subr.bf16.mxu1 %v2384_v2 }
 0xda6   :  { %v2347_v33 = vpop.eup %2346 }
 0xda7   :  { %v1152_v34 = vmul.f32 %v2347_v33, %v2343_v21  ;;  %v2313_v21 = vld [vmem:[%s2951_s11 + $0xa0] sm:$0xff]  }
 0xda8   :  { %2206 = vmatpush3.bf16.msra.mxu1 %v2289_v36 }
 0xda9   :  { %v1154_v35 = vpack.c.bf16 %v1152_v34, %v1152_v34  ;;  %2207 = vmatprep.subr.bf16.mxu1 %v2384_v2  ;;  %v1978_v34 = vld [vmem:[%s2947_s7 + $0x1] ss:$0 sm:$0xff] }
 0xdab   :  { %2200 = vmatmul.mubr.msk.bf16.vlgmr.msra.gmra.mrb[36].mxu0 %vm75_vm2, %v1154_v35 }
 0xdac   :  { %1481 = vmatprep.mubr.bf16.mxu0 %v2386_v14  ;;  %2208 = vmatpush3.bf16.msra.mxu1 %v2290_v37 }
 0xdad   :  { %2209 = vmatprep.subr.bf16.mxu1 %v2384_v2 }
 0xdb0   :  { %2210 = vmatpush3.bf16.msra.mxu1 %v2291_v38 }
 0xdb1   :  { %2110 = vmatprep.subr.bf16.mxu1 %v2304_v9 }
 0xe76   :  { %v1197_v14 = vpop.f32.mrb[12].mxu1 }
 0xe77   :  { %v2195_v39 = vpop.f32.mrb[13].mxu1 }
 0xe78   :  { %v1200_v40 = vpop.f32.mrb[14].mxu1 }
 0xe79   :  { %v2196_v43 = vpop.f32.mrb[15].mxu1 }
 0xe7e   :  { %v1243_v44 = vpop.f32.mrb[36].mxu0 }
 0xe7f   :  { %v1249_v45 = vpack.c.bf16 %v1243_v44, %v1197_v14  ;;  %v2201_v46 = vpop.f32.mrb[37].mxu0  ;;  %v1979_v14 = vld [vmem:[%s2948_s8 + $0x1] ss:$0 sm:$0xff]  ;;  %s2360_s8 = scalar_lea.vmem %s1881_s26, 32 }
 0xe80   :  { %v1246_v47 = vpop.f32.mrb[38].mxu0  ;;  %v2316_v46 = vld [vmem:[%s2951_s11 + $0xf0] sm:$0xff]   ;;  %p2361_p0 = scmp.ne.s32.totalorder %s1881_s26, %s2360_s8  ;;  %p2366_p2 = scmp.lt.s32.totalorder %s2360_s8, %s2360_s8 }
 0xe81   :  { %v2202_v48 = vpop.f32.mrb[39].mxu0  ;;  %2212 = vmatmul.mubr.msk.bf16.vlgmr.msra.gmra.mrb[16].mxu1 %vm187_vm3, %v1249_v45  ;;  %v2315_v45 = vld [vmem:[%s2951_s11 + $0xa8] sm:$0xff]   ;;  %v2317_v47 = vld [vmem:[%s2951_s11 + $0xb0] sm:$0xff]  }
 0xe82   :  { %2111 = vmatpush3.bf16.msra.mxu1 %v2305_v10  ;;  %v2318_v48 = vld [vmem:[%s2951_s11 + $0xf8] sm:$0xff]   ;;  %p2367_p3 = por %p2366_p2, %p2365_p1 }
 0xe83   :  { %2112 = vmatprep.subr.bf16.mxu1 %v2306_v11 }
 0xe84   :  { %p2368_p4 = pnand %p2367_p3, %p2361_p0 }
 0xe86   :  { %2113 = vmatpush3.bf16.msra.mxu1 %v2307_v12 }
 0xe87   :  { %2114 = vmatprep.subr.bf16.mxu1 %v2308_v13 }
 0xe8a   :  { %2115 = vmatpush3.bf16.msra.mxu1 %v2309_v15 }
 0xe8b   :  { %2116 = vmatprep.subr.bf16.mxu1 %v2310_v16 }
 0xe8e   :  { %2117 = vmatpush3.bf16.msra.mxu1 %v2311_v18 }
 0xe8f   :  { %2118 = vmatprep.subr.bf16.mxu1 %v2312_v19 }
 0xe92   :  { %2119 = vmatpush3.bf16.msra.mxu1 %v2313_v21 }
 0xe93   :  { %2120 = vmatprep.subr.bf16.mxu1 %v2314_v24 }
 0xe96   :  { %2121 = vmatpush3.bf16.msra.mxu1 %v2315_v45 }
 0xe97   :  { %2122 = vmatprep.subr.bf16.mxu1 %v2316_v46 }
 0xe9a   :  { %2123 = vmatpush3.bf16.msra.mxu1 %v2317_v47 }
 0xe9b   :  { %2124 = vmatprep.subr.bf16.mxu1 %v2318_v48 }
 0xf54   :  { %v1328_v50 = vpop.f32.mrb[16].mxu1 }
 0xf55   :  { %v1329_v51 = vadd.f32 %v1970_v49, %v1328_v50  ;;  %v2213_v52 = vpop.f32.mrb[17].mxu1  ;;  %v1988_v50 = vld [vmem:[%s2950_s10 + $0x2] sm:$0x3] }
 0xf56   :  { %v1331_v53 = vpop.f32.mrb[18].mxu1  ;;  %v1403_v52 = vrot.slane %v1988_v50, %v2554_v30 }
 0xf57   :  { %v1332_v54 = vadd.f32 %v1970_v49, %v1331_v53  ;;  %v2214_v55 = vpop.f32.mrb[19].mxu1  ;;  %v1335_v17 = vadd.f32 %v1329_v51, %v2734_v41  ;;  %v2319_v49 = vld [vmem:[%s2951_s11 + $0xb8] sm:$0xff]   ;;  %v1399_v51 = vrot.slane %v1988_v50, %v2548_v27  ;;  %v2031_v27 = vld [vmem:[%s2952_s12 + $0x1] ss:$0 sm:$0xff] }
 0xf58   :  { %2125 = vmatpush3.bf16.msra.mxu1 %v2319_v49 }
 0xf59   :  { %v1341_v22 = vsel %vm187_vm3, %v1335_v17, 0.0  ;;  %v1336_v20 = vadd.f32 %v1332_v54, %v2736_v42  ;;  %v2294_v42 = vld [vmem:[%s2949_s9 + $0x44] ss:$8 sps:$4 sm:$0xff]  }
 0xf5a   :  { %1342 = vadd.xlane.f32.xlu1 %v1341_v22  ;;  %1449 = vmatprep.subr.bf16.mxu0 %v2294_v42 }
 0xf5b   :  { %v1344_v23 = vsel %vm187_vm3, %v1336_v20, 0.0  ;;  %1450 = vmatpush1.bf16.msra.mxu0 %v2292_v1 }
 0xf5c   :  { %1345 = vadd.xlane.f32.xlu0 %v1344_v23  ;;  %1451 = vmatprep.subr.bf16.mxu0 %v2297_v3 }
 0xf5f   :  { %1452 = vmatpush1.bf16.msra.mxu0 %v2295_v4 }
 0xf60   :  { %1453 = vmatprep.subr.bf16.mxu0 %v2300_v5 }
 0xf63   :  { %1454 = vmatpush1.bf16.msra.mxu0 %v2298_v6 }
 0xf64   :  { %1455 = vmatprep.subr.bf16.mxu0 %v2303_v8 }
 0xf67   :  { %1456 = vmatpush1.bf16.msra.mxu0 %v2301_v7 }
 0xf68   :  { %2215 = vmatprep.subr.bf16.mxu0 %v2384_v2 }
 0xfe7   :  { %v1343_v56 = vpop.xlane.xlu1 %1342 }
 0xfe8   :  { %v1347_v57 = vmul.f32 0.015625, %v1343_v56 }
 0xfe9   :  { %v1346_v58 = vpop.xlane.xlu0 %1345 }
 0xfea   :  { %v1349_v59 = vsub.f32 %v1335_v17, %v1347_v57  ;;  %v1348_v60 = vmul.f32 0.015625, %v1346_v58 }
 0xfec   :  { %v1350_v61 = vsub.f32 %v1336_v20, %v1348_v60  ;;  %v1351_v62 = vmul.f32 %v1349_v59, %v1349_v59 }
 0xfee   :  { %v1353_v63 = vsel %vm187_vm3, %v1351_v62, 0.0  ;;  %v1352_v0 = vmul.f32 %v1350_v61, %v1350_v61 }
 0xfef   :  { %1354 = vadd.xlane.f32.xlu1 %v1353_v63 }
 0xff0   :  { %v1356_v41 = vsel %vm187_vm3, %v1352_v0, 0.0 }
 0xff1   :  { %1357 = vadd.xlane.f32.xlu0 %v1356_v41 }
0x107c   :  { %v1355_v25 = vpop.xlane.xlu1 %1354 }
0x107d   :  { %v1359_v26 = vmul.f32 0.015625, %v1355_v25 }
0x107e   :  { %v1358_v28 = vpop.xlane.xlu0 %1357 }
0x107f   :  { %v1361_v29 = vadd.f32 1e-05, %v1359_v26  ;;  %v1360_v31 = vmul.f32 0.015625, %v1358_v28 }
0x1081   :  { %2348 = vrsqrt.f32 %v1361_v29  ;;  %v1362_v32 = vadd.f32 1e-05, %v1360_v31 }
0x1083   :  { %2350 = vrsqrt.f32 %v1362_v32 }
0x108b   :  { %v2349_v33 = vpop.eup %2348 }
0x108c   :  { %v1365_v35 = vmul.f32 %v2349_v33, %v1349_v59  ;;  %v2050_v33 = vld [vmem:[%s2953_s13 + $0x1] ss:$0 sm:$0xff] }
0x108d   :  { %v2351_v36 = vpop.eup %2350 }
0x108e   :  { %v1373_v37 = vmul.f32 %v1978_v34, %v1365_v35  ;;  %v1366_v38 = vmul.f32 %v2351_v36, %v1350_v61  ;;  %v2051_v36 = vld [vmem:[%s2954_s14 + $0x1] ss:$0 sm:$0xff] }
0x1090   :  { %v1374_v39 = vmul.f32 %v1978_v34, %v1366_v38  ;;  %v1381_v40 = vadd.f32 %v1979_v14, %v1373_v37 }
0x1092   :  { %v1382_v43 = vadd.f32 %v1979_v14, %v1374_v39 }
0x1094   :  { %v1383_v44 = vpack.c.bf16 %v1382_v43, %v1381_v40 }
0x1096   :  { %1997 = vmatmul.mubr.msk.bf16.vlgmr.msra.gmra.mrb[40].mxu0 %vm187_vm3, %v1383_v44 }
0x1097   :  { %2223 = vmatprep.mubr.msk.bf16.mxu0 %vm2385_vm1, %v2384_v2 }
0x1169   :  { %v1483_v53 = vpop.f32.mrb[40].mxu0 }
0x116a   :  { %v1484_v54 = vadd.f32 %v1483_v53, %v1399_v51  ;;  %v1485_v55 = vpop.f32.mrb[41].mxu0 }
0x116b   :  { %v1486_v17 = vadd.f32 %v1485_v55, %v1403_v52  ;;  %v1487_v22 = vpop.f32.mrb[42].mxu0  ;;  %v2320_v55 = vld [vmem:[%s2957_s17] sm:$0xff]  }
0x116c   :  { %v1488_v20 = vadd.f32 %v1487_v22, %v1399_v51  ;;  %v1489_v23 = vpop.f32.mrb[43].mxu0  ;;  %v1492_v57 = vmax.f32 %v1484_v54, 0.0  ;;  %2216 = vmatpush3.bf16.msra.mxu0 %v2320_v55  ;;  %v2322_v22 = vld [vmem:[%s2957_s17 + $0x10] sm:$0xff]  }
0x116d   :  { %v1490_v56 = vadd.f32 %v1489_v23, %v1403_v52  ;;  %v1493_v59 = vmax.f32 %v1486_v17, 0.0  ;;  %v2321_v17 = vld [vmem:[%s2957_s17 + $0x8] sm:$0xff]   ;;  %2217 = vmatprep.subr.bf16.mxu0 %v2384_v2 }
0x116e   :  { %v1494_v58 = vmax.f32 %v1488_v20, 0.0  ;;  %v2323_v20 = vld [vmem:[%s2957_s17 + $0x18] sm:$0xff]  }
0x116f   :  { %v1495_v60 = vmax.f32 %v1490_v56, 0.0 }
0x1170   :  { %v1496_v61 = vpack.c.bf16 %v1494_v58, %v1492_v57  ;;  %2218 = vmatpush3.bf16.msra.mxu0 %v2321_v17 }
0x1171   :  { %v1497_v62 = vpack.c.bf16 %v1495_v60, %v1493_v59  ;;  %2219 = vmatprep.subr.bf16.mxu0 %v2384_v2 }
0x1173   :  { %1667 = vmatprep.mubr.bf16.mxu1 %v1497_v62  ;;  %v2052_v62 = vld [vmem:[%s2955_s15] ss:$0 sm:$0xff] }
0x1174   :  { %1668 = vmatmul.mubr.bf16.vlgmr.msra.gmra.mrb[20].mxu1 %v1496_v61  ;;  %2220 = vmatpush3.bf16.msra.mxu0 %v2322_v22 }
0x1175   :  { %2221 = vmatprep.subr.bf16.mxu0 %v2384_v2  ;;  %v2053_v2 = vld [vmem:[%s2956_s16] ss:$0 sm:$0xff] }
0x1178   :  { %2222 = vmatpush3.bf16.msra.mxu0 %v2323_v20 }
0x1247   :  { %v2126_v63 = vpop.f32.mrb[20].mxu1 }
0x1248   :  { %v2127_v30 = vpop.f32.mrb[21].mxu1 }
0x1249   :  { %v2128_v0 = vadd.f32 %v2127_v30, %v2126_v63  ;;  %v2129_v41 = vpop.f32.mrb[22].mxu1 }
0x124a   :  { %v2130_v42 = vpop.f32.mrb[23].mxu1 }
0x124b   :  { %v1670_v1 = vadd.f32 %v2128_v0, %v2031_v27  ;;  %v2131_v3 = vadd.f32 %v2130_v42, %v2129_v41 }
0x124d   :  { %v1673_v4 = vadd.f32 %v2131_v3, %v2031_v27  ;;  %v1676_v5 = vadd.f32 %v1670_v1, %v1381_v40 }
0x124f   :  { %v1682_v6 = vsel %vm187_vm3, %v1676_v5, 0.0  ;;  %v1677_v7 = vadd.f32 %v1673_v4, %v1382_v43 }
0x1250   :  { %1683 = vadd.xlane.f32.xlu1 %v1682_v6 }
0x1251   :  { %v1685_v8 = vsel %vm187_vm3, %v1677_v7, 0.0 }
0x1252   :  { %1686 = vadd.xlane.f32.xlu0 %v1685_v8 }
0x12dd   :  { %v1684_v9 = vpop.xlane.xlu1 %1683 }
0x12de   :  { %v1688_v10 = vmul.f32 0.015625, %v1684_v9 }
0x12df   :  { %v1687_v11 = vpop.xlane.xlu0 %1686 }
0x12e0   :  { %v1690_v12 = vsub.f32 %v1676_v5, %v1688_v10  ;;  %v1689_v13 = vmul.f32 0.015625, %v1687_v11 }
0x12e2   :  { %v1691_v15 = vsub.f32 %v1677_v7, %v1689_v13  ;;  %v1692_v16 = vmul.f32 %v1690_v12, %v1690_v12 }
0x12e4   :  { %v1694_v18 = vsel %vm187_vm3, %v1692_v16, 0.0  ;;  %v1693_v19 = vmul.f32 %v1691_v15, %v1691_v15 }
0x12e5   :  { %1695 = vadd.xlane.f32.xlu1 %v1694_v18 }
0x12e6   :  { %v1697_v21 = vsel %vm187_vm3, %v1693_v19, 0.0 }
0x12e7   :  { %1698 = vadd.xlane.f32.xlu0 %v1697_v21 }
0x1372   :  { %v1696_v24 = vpop.xlane.xlu1 %1695 }
0x1373   :  { %v1700_v25 = vmul.f32 0.015625, %v1696_v24 }
0x1374   :  { %v1699_v26 = vpop.xlane.xlu0 %1698 }
0x1375   :  { %v1702_v28 = vadd.f32 1e-05, %v1700_v25  ;;  %v1701_v29 = vmul.f32 0.015625, %v1699_v26 }
0x1377   :  { %2352 = vrsqrt.f32 %v1702_v28  ;;  %v1703_v31 = vadd.f32 1e-05, %v1701_v29  ;;  %v2054_v29 = vld [vmem:[%s2958_s18] ss:$0 sm:$0xff] }
0x1379   :  { %2354 = vrsqrt.f32 %v1703_v31 }
0x1381   :  { %v2353_v32 = vpop.eup %2352 }
0x1382   :  { %v1706_v34 = vmul.f32 %v2353_v32, %v1690_v12 }
0x1383   :  { %v2355_v35 = vpop.eup %2354 }
0x1384   :  { %v1714_v37 = vmul.f32 %v2050_v33, %v1706_v34  ;;  %v1707_v38 = vmul.f32 %v2355_v35, %v1691_v15 }
0x1386   :  { %v1722_v14 = vadd.f32 %v2051_v36, %v1714_v37  ;;  %v1715_v39 = vmul.f32 %v2050_v33, %v1707_v38 }
0x1388   :  { %v1726_v40 = vsel %vm187_vm3, %v1722_v14, 0.0  ;;  %v1723_v43 = vadd.f32 %v2051_v36, %v1715_v39 }
0x1389   :  { %1727 = vadd.xlane.f32.xlu1 %v1726_v40 }
0x138a   :  { %v1729_v44 = vsel %vm187_vm3, %v1723_v43, 0.0 }
0x138b   :  { %1730 = vadd.xlane.f32.xlu0 %v1729_v44 }
0x1416   :  { %v1728_v45 = vpop.xlane.xlu1 %1727 }
0x1417   :  { %v1732_v46 = vmul.f32 0.015625, %v1728_v45 }
0x1418   :  { %v1731_v47 = vpop.xlane.xlu0 %1730 }
0x1419   :  { %v1734_v48 = vsub.f32 %v1722_v14, %v1732_v46  ;;  %v1733_v49 = vmul.f32 0.015625, %v1731_v47 }
0x141b   :  { %v1735_v50 = vsub.f32 %v1723_v43, %v1733_v49  ;;  %v1736_v51 = vmul.f32 %v1734_v48, %v1734_v48 }
0x141d   :  { %v1738_v52 = vsel %vm187_vm3, %v1736_v51, 0.0  ;;  %v1737_v53 = vmul.f32 %v1735_v50, %v1735_v50 }
0x141e   :  { %1739 = vadd.xlane.f32.xlu1 %v1738_v52 }
0x141f   :  { %v1741_v54 = vsel %vm187_vm3, %v1737_v53, 0.0 }
0x1420   :  { %1742 = vadd.xlane.f32.xlu0 %v1741_v54 }
0x14ab   :  { %v1740_v23 = vpop.xlane.xlu1 %1739 }
0x14ac   :  { %v1744_v56 = vmul.f32 0.015625, %v1740_v23 }
0x14ad   :  { %v1743_v57 = vpop.xlane.xlu0 %1742 }
0x14ae   :  { %v1746_v58 = vadd.f32 1e-05, %v1744_v56  ;;  %v1745_v59 = vmul.f32 0.015625, %v1743_v57 }
0x14b0   :  { %2356 = vrsqrt.f32 %v1746_v58  ;;  %v1747_v60 = vadd.f32 1e-05, %v1745_v59 }
0x14b2   :  { %2358 = vrsqrt.f32 %v1747_v60 }
0x14ba   :  { %v2357_v61 = vpop.eup %2356 }
0x14bb   :  { %v1750_v63 = vmul.f32 %v2357_v61, %v1734_v48 }
0x14bc   :  { %v2359_v27 = vpop.eup %2358 }
0x14bd   :  { %v1758_v30 = vmul.f32 %v2052_v62, %v1750_v63  ;;  %v1751_v0 = vmul.f32 %v2359_v27, %v1735_v50 }
0x14bf   :  { %v1766_v41 = vadd.f32 %v2053_v2, %v1758_v30  ;;  %v1759_v42 = vmul.f32 %v2052_v62, %v1751_v0 }
0x14c1   :  { %v1768_v1 = vsel %vm187_vm3, %v1766_v41, -inf  ;;  %v1767_v3 = vadd.f32 %v2053_v2, %v1759_v42 }
0x14c2   :  { %v1769_v4 = vrot.slane %v1768_v1, 4 }
0x14c3   :  { %v1775_v5 = vsel %vm187_vm3, %v1767_v3, -inf }
0x14c4   :  { %v1770_v6 = vmax.f32 %v1768_v1, %v1769_v4  ;;  %v1776_v7 = vrot.slane %v1775_v5, 4 }
0x14c6   :  { %v1771_v8 = vrot.slane %v1770_v6, 2  ;;  %v1777_v9 = vmax.f32 %v1775_v5, %v1776_v7 }
0x14c8   :  { %v1778_v10 = vrot.slane %v1777_v9, 2  ;;  %v1772_v11 = vmax.f32 %v1770_v6, %v1771_v8 }
0x14ca   :  { %v1773_v12 = vrot.slane %v1772_v11, 1  ;;  %v1779_v13 = vmax.f32 %v1777_v9, %v1778_v10 }
0x14cc   :  { %v1774_v15 = vmax.f32 %v1772_v11, %v1773_v12  ;;  %v1780_v16 = vrot.slane %v1779_v13, 1 }
0x14ce   :  { %v1781_v18 = vmax.f32 %v1779_v13, %v1780_v16  ;;  %v1782_v19 = vpack.c.bf16 %v1774_v15, %v1774_v15 }
0x14d0   :  { %v1783_v21 = vpack.c.bf16 %v1781_v18, %v1781_v18  ;;  %v1801_v24 = vunpack.c.l.b16 %v1782_v19 }
0x14d2   :  { %v1802_v25 = vunpack.c.l.b16 %v1783_v21 }
0x14d4   :  { %v1804_v26 = vsel %vm1803_vm4, %v1802_v25, %v1801_v24 }
0x14d5   :  { %v1805_v28 = vpack.c.b16 %v1804_v26, %v1804_v26 }
0x14d7   :  { %2224 = vmatmul.mubr.msk.bf16.vlgmr.msra.gmra.mrb[44].mxu0 %vm187_vm3, %v1805_v28 }
0x15aa   :  { %v1867_v31 = vpop.f32.mrb[44].mxu0 }
0x15ab   :  { %v1868_v32 = vadd.f32 %v2054_v29, %v1867_v31  ;;  %v2225_v33 = vpop.f32.mrb[45].mxu0 }
0x15ac   :  { %v1870_v34 = vpop.f32.mrb[46].mxu0 }
0x15ad   :  { %1873 = vst [vmem:[#allocation2] sm:$0x3] %v1868_v32  ;;  %v2226_v35 = vpop.f32.mrb[47].mxu0 }
0x15ae   :  { %2371 = shalt.err (!%p2368_p4)
}
0x15af   :  { %s2372_s18 = scalar_lea.hbm %s2959_s19, 32 }
0x15b0   :  { %p2373_p5 = scmp.ne.s32.totalorder %s2959_s19, %s2372_s18  ;;  %p2376_p6 = scmp.lt.u32.totalorder %s2372_s18, %s2959_s19 }
0x15b2   :  { %p2378_p7 = pnand %p2376_p6, %p2373_p5 }
0x15b4   :  { %2381 = shalt.err (!%p2378_p7)
}
0x15b5   :  { %1883 = dma.vmem_to_hbm [thread:$0]  %s1881_s26, 32, %s2959_s19, [#allocation3]  }
0x15b6   :  { %2382 = dma.done.wait [#allocation3], 32  }
0x15b7   :  { %2383 = vsyncadd [#allocation3], 4294967264 }
0x15b8   :  { %1887 = vsyncpa [#allocation3], 1 }

</bundles_post_ra>
